<compile_context>
chip_gen: v7x
topology: tpu7x:2x2x1
jax: 0.10.0
libtpu: 0.0.40
codegen_flags: <defaults>
</compile_context>

<pallas_src>
import functools

import jax
import jax.numpy as jnp
from jax.experimental import pallas as pl
from jax.experimental.pallas import tpu as pltpu


_CL = 16  # scratch column of the first "real" image column (bf16 tile aligned)


def _conv3x3_bn_kernel(xt_ref, xm_ref, xb_ref, w_ref, s_ref, b_ref, o_ref,
                       xpad_ref, *, relu: bool):
    # xt_ref: (1, 1, W, Cin)  bf16 row above the block (clamped; zeroed at i==0)
    # xm_ref: (1, R, W, Cin)  bf16 rows this step produces output for
    # xb_ref: (1, 1, W, Cin)  bf16 row below the block (clamped; zeroed at last)
    # w_ref : (3, 3, Cin, ct) bf16 weights
    # s_ref/b_ref: (1, ct)    folded-BN scale / bias (f32)
    # o_ref : (1, R, W, ct)   f32 output block
    # xpad_ref: VMEM scratch (R + 2, W + _CL + 1, Cin) bf16 padded input tile
    i = pl.program_id(1)
    n_rb = pl.num_programs(1)
    _, R, W, Cin = xm_ref.shape
    ct = o_ref.shape[-1]

    # ---- assemble the zero-padded (halo) tile in VMEM scratch -------------
    # Real columns occupy [_CL, _CL + W); halo columns are _CL - 1 and _CL + W.
    xpad_ref[1:R + 1, _CL:_CL + W, :] = xm_ref[0]
    top = xt_ref[0]
    xpad_ref[0:1, _CL:_CL + W, :] = jnp.where(i > 0, top, jnp.zeros_like(top))
    bot = xb_ref[0]
    xpad_ref[R + 1:R + 2, _CL:_CL + W, :] = jnp.where(
        i < n_rb - 1, bot, jnp.zeros_like(bot))
    zcol = jnp.zeros((R + 2, 1, Cin), xpad_ref.dtype)
    xpad_ref[:, _CL - 1:_CL, :] = zcol
    xpad_ref[:, _CL + W:_CL + W + 1, :] = zcol

    # ---- 3x3 conv = 9 shifted MXU matmuls (bf16 in, f32 accumulate) -------
    acc = None
    for dy in range(3):
        for dx in range(3):
            c0 = _CL - 1 + dx
            patch = xpad_ref[dy:dy + R, c0:c0 + W, :]           # ref slice load
            patch = patch.reshape(R * W, Cin)
            part = jnp.dot(patch, w_ref[dy, dx],
                           preferred_element_type=jnp.float32)
            acc = part if acc is None else acc + part

    y = acc * s_ref[...] + b_ref[...]                # folded BatchNorm affine
    if relu:
        y = jnp.maximum(y, 0.0)
    o_ref[...] = y.reshape(1, R, W, ct).astype(o_ref.dtype)


def _largest_divisor_at_most(n, cap):
    cap = max(1, min(n, cap))
    for d in range(cap, 0, -1):
        if n % d == 0:
            return d
    return 1


def conv3x3_bn_act(x_nhwc, w_hwio, scale, bias, *, relu=True, block_rows=None):
    """3x3 conv (stride 1, pad 1) + per-channel affine (+ ReLU), NHWC input."""
    B, H, W, Cin = x_nhwc.shape
    Cout = w_hwio.shape[-1]

    # Output-channel tile: 256 fills the 256x256 MXU on v6e/v7x; 128 stays
    # lane-dense and is right-sized for v5e's 128x128 MXU.
    if Cout % 256 == 0:
        ct = 256
    elif Cout % 128 == 0:
        ct = 128
    else:
        # TODO(synk): pad Cout to a multiple of 128 for lane-dense stores.
        ct = Cout

    # Row tile: aim for M = R*W >= ~512 while keeping per-step VMEM small.
    if block_rows is None:
        block_rows = _largest_divisor_at_most(H, max(8, 512 // max(W, 1)))
    R = block_rows
    assert H % R == 0, (H, R)

    x_bf16 = x_nhwc.astype(jnp.bfloat16)
    w_bf16 = w_hwio.astype(jnp.bfloat16)
    scale2 = scale.reshape(1, Cout).astype(jnp.float32)
    bias2 = bias.reshape(1, Cout).astype(jnp.float32)

    kern = functools.partial(_conv3x3_bn_kernel, relu=relu)
    grid = (B, H // R, Cout // ct)

    return pl.pallas_call(
        kern,
        out_shape=jax.ShapeDtypeStruct((B, H, W, Cout), jnp.float32),
        grid=grid,
        in_specs=[
            # halo row above (block size 1 along H => block index == row index)
            pl.BlockSpec((1, 1, W, Cin),
                         lambda b, i, j: (b, jnp.maximum(i * R - 1, 0), 0, 0)),
            # the R rows of this block
            pl.BlockSpec((1, R, W, Cin), lambda b, i, j: (b, i, 0, 0)),
            # halo row below
            pl.BlockSpec((1, 1, W, Cin),
                         lambda b, i, j: (b, jnp.minimum(i * R + R, H - 1), 0, 0)),
            # weights + folded-BN affine, tiled over Cout only
            pl.BlockSpec((3, 3, Cin, ct), lambda b, i, j: (0, 0, 0, j)),
            pl.BlockSpec((1, ct), lambda b, i, j: (0, j)),
            pl.BlockSpec((1, ct), lambda b, i, j: (0, j)),
        ],
        out_specs=pl.BlockSpec((1, R, W, ct), lambda b, i, j: (b, i, 0, j)),
        scratch_shapes=[pltpu.VMEM((R + 2, W + _CL + 1, Cin), jnp.bfloat16)],
        compiler_params=pltpu.CompilerParams(
            dimension_semantics=("parallel", "parallel", "parallel"),
            vmem_limit_bytes=32 * 1024 * 1024),
    )(x_bf16, x_bf16, x_bf16, w_bf16, scale2, bias2)


def conv_block_forward(x_nchw, w_oihw, b, gamma, beta, running_mean,
                       running_var, *, with_nonlinearity=True, eps=1e-5,
                       block_rows=None):
    """ConvBlock.forward: Conv2d(3x3, pad=1) -> BatchNorm2d -> (ReLU)."""
    # TODO(synk): only the module defaults (kernel_size=3, padding=1, stride=1)
    # are implemented; BatchNorm uses eval-mode running statistics.
    x = jnp.transpose(x_nchw, (0, 2, 3, 1)).astype(jnp.float32)      # NCHW->NHWC
    w_hwio = jnp.transpose(w_oihw, (2, 3, 1, 0)).astype(jnp.float32)  # OIHW->HWIO
    scale = gamma * jax.lax.rsqrt(running_var + eps)
    bias = (b - running_mean) * scale + beta
    y = conv3x3_bn_act(x, w_hwio, scale, bias, relu=with_nonlinearity,
                       block_rows=block_rows)
    return jnp.transpose(y, (0, 3, 1, 2))                             # NHWC->NCHW


def _reference(x_nchw, w_oihw, b, gamma, beta, rmean, rvar,
               with_nonlinearity=True, eps=1e-5):
    """Pure-JAX reference using the same bf16-rounded MXU operands."""
    x = jnp.transpose(x_nchw, (0, 2, 3, 1)).astype(jnp.float32)
    w = jnp.transpose(w_oihw, (2, 3, 1, 0)).astype(jnp.float32)
    xb = x.astype(jnp.bfloat16).astype(jnp.float32)
    wb = w.astype(jnp.bfloat16).astype(jnp.float32)
    y = jax.lax.conv_general_dilated(
        xb, wb, window_strides=(1, 1), padding=((1, 1), (1, 1)),
        dimension_numbers=("NHWC", "HWIO", "NHWC"),
        precision=jax.lax.Precision.HIGHEST)
    y = y + b
    scale = gamma * jax.lax.rsqrt(rvar + eps)
    y = (y - rmean) * scale + beta
    if with_nonlinearity:
        y = jnp.maximum(y, 0.0)
    return jnp.transpose(y, (0, 3, 1, 2))


if __name__ == "__main__":
    key = jax.random.PRNGKey(0)
    kx, kw, kb, kg, kbe, km, kv = jax.random.split(key, 7)

    # Small test shapes; block_rows=8 exercises the row-halo exchange.
    B, Cin, H, W = 2, 32, 16, 16
    Cout = 64

    x = jax.random.normal(kx, (B, Cin, H, W), jnp.float32)
    w = jax.random.normal(kw, (Cout, Cin, 3, 3), jnp.float32) / jnp.sqrt(9.0 * Cin)
    b = 0.02 * jax.random.normal(kb, (Cout,), jnp.float32)
    gamma = 1.0 + 0.1 * jax.random.normal(kg, (Cout,), jnp.float32)
    beta = 0.1 * jax.random.normal(kbe, (Cout,), jnp.float32)
    rmean = 0.1 * jax.random.normal(km, (Cout,), jnp.float32)
    rvar = 1.0 + 0.1 * jax.random.uniform(kv, (Cout,), jnp.float32)

    out = conv_block_forward(x, w, b, gamma, beta, rmean, rvar, block_rows=8)
    out = jax.block_until_ready(out)

    assert out.shape == (B, Cout, H, W), out.shape
    assert bool(jnp.all(jnp.isfinite(out)))

    ref = _reference(x, w, b, gamma, beta, rmean, rvar)
    max_err = float(jnp.max(jnp.abs(out - ref)))
    assert max_err < 5e-2, max_err

    print("KERNEL_OK")
</pallas_src>

<mosaic_0001>
module attributes {stable_mosaic.version = 11 : i64} {
  func.func @_conv3x3_bn_kernel(%arg0: i32, %arg1: i32, %arg2: i32, %arg3: memref<1x1x16x32xbf16, #tpu.memory_space<vmem>>, %arg4: memref<1x8x16x32xbf16, #tpu.memory_space<vmem>>, %arg5: memref<1x1x16x32xbf16, #tpu.memory_space<vmem>>, %arg6: memref<3x3x32x64xbf16, #tpu.memory_space<vmem>>, %arg7: memref<1x64xf32, #tpu.memory_space<vmem>>, %arg8: memref<1x64xf32, #tpu.memory_space<vmem>>, %arg9: memref<1x8x16x64xf32, #tpu.memory_space<vmem>>, %arg10: memref<10x33x32xbf16, #tpu.memory_space<vmem>>) attributes {dimension_semantics = [#tpu.dimension_semantics<parallel>, #tpu.dimension_semantics<parallel>, #tpu.dimension_semantics<parallel>], iteration_bounds = array<i64: 2, 2, 1>, scalar_prefetch = 0 : i64, scratch_operands = 1 : i64, tpu.core_type = #tpu.core_type<tc>, window_params = [{transform_indices = @transform_0, window_bounds = array<i64: 1, 1, 16, 32>}, {transform_indices = @transform_1, window_bounds = array<i64: 1, 8, 16, 32>}, {transform_indices = @transform_2, window_bounds = array<i64: 1, 1, 16, 32>}, {transform_indices = @transform_3, window_bounds = array<i64: 3, 3, 32, 64>}, {transform_indices = @transform_4, window_bounds = array<i64: 1, 64>}, {transform_indices = @transform_5, window_bounds = array<i64: 1, 64>}, {transform_indices = @transform_6, window_bounds = array<i64: 1, 8, 16, 64>}]} {
    %c0 = arith.constant 0 : index
    %c0_0 = arith.constant 0 : index
    %c0_1 = arith.constant 0 : index
    %c0_2 = arith.constant 0 : index
    %0 = vector.load %arg4[%c0, %c0_0, %c0_1, %c0_2] : memref<1x8x16x32xbf16, #tpu.memory_space<vmem>>, vector<1x8x16x32xbf16>
    %1 = vector.shape_cast %0 : vector<1x8x16x32xbf16> to vector<8x16x32xbf16>
    %c1 = arith.constant 1 : index
    %c16 = arith.constant 16 : index
    %c0_3 = arith.constant 0 : index
    %2 = vector.load %arg10[%c1, %c16, %c0_3] : memref<10x33x32xbf16, #tpu.memory_space<vmem>>, vector<8x16x32xbf16>
    tpu.vector_store %arg10[%c1, %c16, %c0_3], %1 {strides = array<i32>} : memref<10x33x32xbf16, #tpu.memory_space<vmem>>, vector<8x16x32xbf16>,
    %c0_4 = arith.constant 0 : index
    %c0_5 = arith.constant 0 : index
    %c0_6 = arith.constant 0 : index
    %c0_7 = arith.constant 0 : index
    %3 = vector.load %arg3[%c0_4, %c0_5, %c0_6, %c0_7] : memref<1x1x16x32xbf16, #tpu.memory_space<vmem>>, vector<1x1x16x32xbf16>
    %4 = vector.shape_cast %3 : vector<1x1x16x32xbf16> to vector<1x16x32xbf16>
    %c0_i32 = arith.constant 0 : i32
    %5 = arith.cmpi sgt, %arg1, %c0_i32 : i32
    %cst = arith.constant 0.000000e+00 : bf16
    %6 = vector.broadcast %cst : bf16 to vector<1x16x32xbf16>
    %7 = arith.select %5, %4, %6 : vector<1x16x32xbf16>
    %c0_8 = arith.constant 0 : index
    %c16_9 = arith.constant 16 : index
    %c0_10 = arith.constant 0 : index
    %8 = vector.load %arg10[%c0_8, %c16_9, %c0_10] : memref<10x33x32xbf16, #tpu.memory_space<vmem>>, vector<1x16x32xbf16>
    tpu.vector_store %arg10[%c0_8, %c16_9, %c0_10], %7 {strides = array<i32>} : memref<10x33x32xbf16, #tpu.memory_space<vmem>>, vector<1x16x32xbf16>,
    %c0_11 = arith.constant 0 : index
    %c0_12 = arith.constant 0 : index
    %c0_13 = arith.constant 0 : index
    %c0_14 = arith.constant 0 : index
    %9 = vector.load %arg5[%c0_11, %c0_12, %c0_13, %c0_14] : memref<1x1x16x32xbf16, #tpu.memory_space<vmem>>, vector<1x1x16x32xbf16>
    %10 = vector.shape_cast %9 : vector<1x1x16x32xbf16> to vector<1x16x32xbf16>
    %c1_i32 = arith.constant 1 : i32
    %11 = arith.cmpi slt, %arg1, %c1_i32 : i32
    %cst_15 = arith.constant 0.000000e+00 : bf16
    %12 = vector.broadcast %cst_15 : bf16 to vector<1x16x32xbf16>
    %13 = arith.select %11, %10, %12 : vector<1x16x32xbf16>
    %c9 = arith.constant 9 : index
    %c16_16 = arith.constant 16 : index
    %c0_17 = arith.constant 0 : index
    %14 = vector.load %arg10[%c9, %c16_16, %c0_17] : memref<10x33x32xbf16, #tpu.memory_space<vmem>>, vector<1x16x32xbf16>
    tpu.vector_store %arg10[%c9, %c16_16, %c0_17], %13 {strides = array<i32>} : memref<10x33x32xbf16, #tpu.memory_space<vmem>>, vector<1x16x32xbf16>,
    %cst_18 = arith.constant 0.000000e+00 : bf16
    %15 = vector.broadcast %cst_18 : bf16 to vector<10x1x32xbf16>
    %c0_19 = arith.constant 0 : index
    %c15 = arith.constant 15 : index
    %c0_20 = arith.constant 0 : index
    %16 = vector.load %arg10[%c0_19, %c15, %c0_20] : memref<10x33x32xbf16, #tpu.memory_space<vmem>>, vector<10x1x32xbf16>
    tpu.vector_store %arg10[%c0_19, %c15, %c0_20], %15 {strides = array<i32>} : memref<10x33x32xbf16, #tpu.memory_space<vmem>>, vector<10x1x32xbf16>,
    %c0_21 = arith.constant 0 : index
    %c32 = arith.constant 32 : index
    %c0_22 = arith.constant 0 : index
    %17 = vector.load %arg10[%c0_21, %c32, %c0_22] : memref<10x33x32xbf16, #tpu.memory_space<vmem>>, vector<10x1x32xbf16>
    tpu.vector_store %arg10[%c0_21, %c32, %c0_22], %15 {strides = array<i32>} : memref<10x33x32xbf16, #tpu.memory_space<vmem>>, vector<10x1x32xbf16>,
    %c0_23 = arith.constant 0 : index
    %c15_24 = arith.constant 15 : index
    %c0_25 = arith.constant 0 : index
    %18 = vector.load %arg10[%c0_23, %c15_24, %c0_25] : memref<10x33x32xbf16, #tpu.memory_space<vmem>>, vector<8x16x32xbf16>
    %19 = vector.shape_cast %18 : vector<8x16x32xbf16> to vector<128x32xbf16>
    %c0_26 = arith.constant 0 : index
    %c0_27 = arith.constant 0 : index
    %c0_28 = arith.constant 0 : index
    %c0_29 = arith.constant 0 : index
    %20 = vector.load %arg6[%c0_26, %c0_27, %c0_28, %c0_29] : memref<3x3x32x64xbf16, #tpu.memory_space<vmem>>, vector<1x1x32x64xbf16>
    %21 = vector.shape_cast %20 : vector<1x1x32x64xbf16> to vector<32x64xbf16>
    %cst_30 = arith.constant dense<0.000000e+00> : vector<128x64xf32>
    %22 = tpu.matmul %19, %21, %cst_30 {dimension_numbers = #tpu.dot_dimension_numbers<[1], [0], [0], [1], [0, 0, 1, 1], [], []>} : vector<128x32xbf16>, vector<32x64xbf16>, vector<128x64xf32> -> vector<128x64xf32>
    %c0_31 = arith.constant 0 : index
    %c16_32 = arith.constant 16 : index
    %c0_33 = arith.constant 0 : index
    %23 = vector.load %arg10[%c0_31, %c16_32, %c0_33] : memref<10x33x32xbf16, #tpu.memory_space<vmem>>, vector<8x16x32xbf16>
    %24 = vector.shape_cast %23 : vector<8x16x32xbf16> to vector<128x32xbf16>
    %c0_34 = arith.constant 0 : index
    %c1_35 = arith.constant 1 : index
    %c0_36 = arith.constant 0 : index
    %c0_37 = arith.constant 0 : index
    %25 = vector.load %arg6[%c0_34, %c1_35, %c0_36, %c0_37] : memref<3x3x32x64xbf16, #tpu.memory_space<vmem>>, vector<1x1x32x64xbf16>
    %26 = vector.shape_cast %25 : vector<1x1x32x64xbf16> to vector<32x64xbf16>
    %cst_38 = arith.constant dense<0.000000e+00> : vector<128x64xf32>
    %27 = tpu.matmul %24, %26, %cst_38 {dimension_numbers = #tpu.dot_dimension_numbers<[1], [0], [0], [1], [0, 0, 1, 1], [], []>} : vector<128x32xbf16>, vector<32x64xbf16>, vector<128x64xf32> -> vector<128x64xf32>
    %28 = arith.addf %22, %27 : vector<128x64xf32>
    %c0_39 = arith.constant 0 : index
    %c17 = arith.constant 17 : index
    %c0_40 = arith.constant 0 : index
    %29 = vector.load %arg10[%c0_39, %c17, %c0_40] : memref<10x33x32xbf16, #tpu.memory_space<vmem>>, vector<8x16x32xbf16>
    %30 = vector.shape_cast %29 : vector<8x16x32xbf16> to vector<128x32xbf16>
    %c0_41 = arith.constant 0 : index
    %c2 = arith.constant 2 : index
    %c0_42 = arith.constant 0 : index
    %c0_43 = arith.constant 0 : index
    %31 = vector.load %arg6[%c0_41, %c2, %c0_42, %c0_43] : memref<3x3x32x64xbf16, #tpu.memory_space<vmem>>, vector<1x1x32x64xbf16>
    %32 = vector.shape_cast %31 : vector<1x1x32x64xbf16> to vector<32x64xbf16>
    %cst_44 = arith.constant dense<0.000000e+00> : vector<128x64xf32>
    %33 = tpu.matmul %30, %32, %cst_44 {dimension_numbers = #tpu.dot_dimension_numbers<[1], [0], [0], [1], [0, 0, 1, 1], [], []>} : vector<128x32xbf16>, vector<32x64xbf16>, vector<128x64xf32> -> vector<128x64xf32>
    %34 = arith.addf %28, %33 : vector<128x64xf32>
    %c1_45 = arith.constant 1 : index
    %c15_46 = arith.constant 15 : index
    %c0_47 = arith.constant 0 : index
    %35 = vector.load %arg10[%c1_45, %c15_46, %c0_47] : memref<10x33x32xbf16, #tpu.memory_space<vmem>>, vector<8x16x32xbf16>
    %36 = vector.shape_cast %35 : vector<8x16x32xbf16> to vector<128x32xbf16>
    %c1_48 = arith.constant 1 : index
    %c0_49 = arith.constant 0 : index
    %c0_50 = arith.constant 0 : index
    %c0_51 = arith.constant 0 : index
    %37 = vector.load %arg6[%c1_48, %c0_49, %c0_50, %c0_51] : memref<3x3x32x64xbf16, #tpu.memory_space<vmem>>, vector<1x1x32x64xbf16>
    %38 = vector.shape_cast %37 : vector<1x1x32x64xbf16> to vector<32x64xbf16>
    %cst_52 = arith.constant dense<0.000000e+00> : vector<128x64xf32>
    %39 = tpu.matmul %36, %38, %cst_52 {dimension_numbers = #tpu.dot_dimension_numbers<[1], [0], [0], [1], [0, 0, 1, 1], [], []>} : vector<128x32xbf16>, vector<32x64xbf16>, vector<128x64xf32> -> vector<128x64xf32>
    %40 = arith.addf %34, %39 : vector<128x64xf32>
    %c1_53 = arith.constant 1 : index
    %c16_54 = arith.constant 16 : index
    %c0_55 = arith.constant 0 : index
    %41 = vector.load %arg10[%c1_53, %c16_54, %c0_55] : memref<10x33x32xbf16, #tpu.memory_space<vmem>>, vector<8x16x32xbf16>
    %42 = vector.shape_cast %41 : vector<8x16x32xbf16> to vector<128x32xbf16>
    %c1_56 = arith.constant 1 : index
    %c1_57 = arith.constant 1 : index
    %c0_58 = arith.constant 0 : index
    %c0_59 = arith.constant 0 : index
    %43 = vector.load %arg6[%c1_56, %c1_57, %c0_58, %c0_59] : memref<3x3x32x64xbf16, #tpu.memory_space<vmem>>, vector<1x1x32x64xbf16>
    %44 = vector.shape_cast %43 : vector<1x1x32x64xbf16> to vector<32x64xbf16>
    %cst_60 = arith.constant dense<0.000000e+00> : vector<128x64xf32>
    %45 = tpu.matmul %42, %44, %cst_60 {dimension_numbers = #tpu.dot_dimension_numbers<[1], [0], [0], [1], [0, 0, 1, 1], [], []>} : vector<128x32xbf16>, vector<32x64xbf16>, vector<128x64xf32> -> vector<128x64xf32>
    %46 = arith.addf %40, %45 : vector<128x64xf32>
    %c1_61 = arith.constant 1 : index
    %c17_62 = arith.constant 17 : index
    %c0_63 = arith.constant 0 : index
    %47 = vector.load %arg10[%c1_61, %c17_62, %c0_63] : memref<10x33x32xbf16, #tpu.memory_space<vmem>>, vector<8x16x32xbf16>
    %48 = vector.shape_cast %47 : vector<8x16x32xbf16> to vector<128x32xbf16>
    %c1_64 = arith.constant 1 : index
    %c2_65 = arith.constant 2 : index
    %c0_66 = arith.constant 0 : index
    %c0_67 = arith.constant 0 : index
    %49 = vector.load %arg6[%c1_64, %c2_65, %c0_66, %c0_67] : memref<3x3x32x64xbf16, #tpu.memory_space<vmem>>, vector<1x1x32x64xbf16>
    %50 = vector.shape_cast %49 : vector<1x1x32x64xbf16> to vector<32x64xbf16>
    %cst_68 = arith.constant dense<0.000000e+00> : vector<128x64xf32>
    %51 = tpu.matmul %48, %50, %cst_68 {dimension_numbers = #tpu.dot_dimension_numbers<[1], [0], [0], [1], [0, 0, 1, 1], [], []>} : vector<128x32xbf16>, vector<32x64xbf16>, vector<128x64xf32> -> vector<128x64xf32>
    %52 = arith.addf %46, %51 : vector<128x64xf32>
    %c2_69 = arith.constant 2 : index
    %c15_70 = arith.constant 15 : index
    %c0_71 = arith.constant 0 : index
    %53 = vector.load %arg10[%c2_69, %c15_70, %c0_71] : memref<10x33x32xbf16, #tpu.memory_space<vmem>>, vector<8x16x32xbf16>
    %54 = vector.shape_cast %53 : vector<8x16x32xbf16> to vector<128x32xbf16>
    %c2_72 = arith.constant 2 : index
    %c0_73 = arith.constant 0 : index
    %c0_74 = arith.constant 0 : index
    %c0_75 = arith.constant 0 : index
    %55 = vector.load %arg6[%c2_72, %c0_73, %c0_74, %c0_75] : memref<3x3x32x64xbf16, #tpu.memory_space<vmem>>, vector<1x1x32x64xbf16>
    %56 = vector.shape_cast %55 : vector<1x1x32x64xbf16> to vector<32x64xbf16>
    %cst_76 = arith.constant dense<0.000000e+00> : vector<128x64xf32>
    %57 = tpu.matmul %54, %56, %cst_76 {dimension_numbers = #tpu.dot_dimension_numbers<[1], [0], [0], [1], [0, 0, 1, 1], [], []>} : vector<128x32xbf16>, vector<32x64xbf16>, vector<128x64xf32> -> vector<128x64xf32>
    %58 = arith.addf %52, %57 : vector<128x64xf32>
    %c2_77 = arith.constant 2 : index
    %c16_78 = arith.constant 16 : index
    %c0_79 = arith.constant 0 : index
    %59 = vector.load %arg10[%c2_77, %c16_78, %c0_79] : memref<10x33x32xbf16, #tpu.memory_space<vmem>>, vector<8x16x32xbf16>
    %60 = vector.shape_cast %59 : vector<8x16x32xbf16> to vector<128x32xbf16>
    %c2_80 = arith.constant 2 : index
    %c1_81 = arith.constant 1 : index
    %c0_82 = arith.constant 0 : index
    %c0_83 = arith.constant 0 : index
    %61 = vector.load %arg6[%c2_80, %c1_81, %c0_82, %c0_83] : memref<3x3x32x64xbf16, #tpu.memory_space<vmem>>, vector<1x1x32x64xbf16>
    %62 = vector.shape_cast %61 : vector<1x1x32x64xbf16> to vector<32x64xbf16>
    %cst_84 = arith.constant dense<0.000000e+00> : vector<128x64xf32>
    %63 = tpu.matmul %60, %62, %cst_84 {dimension_numbers = #tpu.dot_dimension_numbers<[1], [0], [0], [1], [0, 0, 1, 1], [], []>} : vector<128x32xbf16>, vector<32x64xbf16>, vector<128x64xf32> -> vector<128x64xf32>
    %64 = arith.addf %58, %63 : vector<128x64xf32>
    %c2_85 = arith.constant 2 : index
    %c17_86 = arith.constant 17 : index
    %c0_87 = arith.constant 0 : index
    %65 = vector.load %arg10[%c2_85, %c17_86, %c0_87] : memref<10x33x32xbf16, #tpu.memory_space<vmem>>, vector<8x16x32xbf16>
    %66 = vector.shape_cast %65 : vector<8x16x32xbf16> to vector<128x32xbf16>
    %c2_88 = arith.constant 2 : index
    %c2_89 = arith.constant 2 : index
    %c0_90 = arith.constant 0 : index
    %c0_91 = arith.constant 0 : index
    %67 = vector.load %arg6[%c2_88, %c2_89, %c0_90, %c0_91] : memref<3x3x32x64xbf16, #tpu.memory_space<vmem>>, vector<1x1x32x64xbf16>
    %68 = vector.shape_cast %67 : vector<1x1x32x64xbf16> to vector<32x64xbf16>
    %cst_92 = arith.constant dense<0.000000e+00> : vector<128x64xf32>
    %69 = tpu.matmul %66, %68, %cst_92 {dimension_numbers = #tpu.dot_dimension_numbers<[1], [0], [0], [1], [0, 0, 1, 1], [], []>} : vector<128x32xbf16>, vector<32x64xbf16>, vector<128x64xf32> -> vector<128x64xf32>
    %70 = arith.addf %64, %69 : vector<128x64xf32>
    %c0_93 = arith.constant 0 : index
    %c0_94 = arith.constant 0 : index
    %71 = vector.load %arg7[%c0_93, %c0_94] : memref<1x64xf32, #tpu.memory_space<vmem>>, vector<1x64xf32>
    %72 = vector.broadcast %71 : vector<1x64xf32> to vector<128x64xf32>
    %73 = arith.mulf %70, %72 : vector<128x64xf32>
    %c0_95 = arith.constant 0 : index
    %c0_96 = arith.constant 0 : index
    %74 = vector.load %arg8[%c0_95, %c0_96] : memref<1x64xf32, #tpu.memory_space<vmem>>, vector<1x64xf32>
    %75 = vector.broadcast %74 : vector<1x64xf32> to vector<128x64xf32>
    %76 = arith.addf %73, %75 : vector<128x64xf32>
    %cst_97 = arith.constant 0.000000e+00 : f32
    %77 = vector.broadcast %cst_97 : f32 to vector<128x64xf32>
    %78 = arith.maximumf %76, %77 : vector<128x64xf32>
    %79 = vector.shape_cast %78 : vector<128x64xf32> to vector<1x8x16x64xf32>
    %c0_98 = arith.constant 0 : index
    %c0_99 = arith.constant 0 : index
    %c0_100 = arith.constant 0 : index
    %c0_101 = arith.constant 0 : index
    %80 = vector.load %arg9[%c0_98, %c0_99, %c0_100, %c0_101] : memref<1x8x16x64xf32, #tpu.memory_space<vmem>>, vector<1x8x16x64xf32>
    tpu.vector_store %arg9[%c0_98, %c0_99, %c0_100, %c0_101], %79 {strides = array<i32>} : memref<1x8x16x64xf32, #tpu.memory_space<vmem>>, vector<1x8x16x64xf32>,
    return
  }
  func.func @transform_0(%arg0: i32, %arg1: i32, %arg2: i32) -> (i32, i32, i32, i32) {
    %c8_i32 = arith.constant 8 : i32
    %0 = arith.muli %arg1, %c8_i32 : i32
    %c1_i32 = arith.constant 1 : i32
    %1 = arith.subi %0, %c1_i32 : i32
    %c0_i32 = arith.constant 0 : i32
    %2 = arith.maxsi %1, %c0_i32 : i32
    %c0_i32_0 = arith.constant 0 : i32
    %c0_i32_1 = arith.constant 0 : i32
    %c0_i32_2 = arith.constant 0 : i32
    return %arg0, %2, %c0_i32_0, %c0_i32_1 : i32, i32, i32, i32
  }
  func.func @transform_1(%arg0: i32, %arg1: i32, %arg2: i32) -> (i32, i32, i32, i32) {
    %c0_i32 = arith.constant 0 : i32
    %c0_i32_0 = arith.constant 0 : i32
    %c0_i32_1 = arith.constant 0 : i32
    return %arg0, %arg1, %c0_i32, %c0_i32_0 : i32, i32, i32, i32
  }
  func.func @transform_2(%arg0: i32, %arg1: i32, %arg2: i32) -> (i32, i32, i32, i32) {
    %c8_i32 = arith.constant 8 : i32
    %0 = arith.muli %arg1, %c8_i32 : i32
    %c8_i32_0 = arith.constant 8 : i32
    %1 = arith.addi %0, %c8_i32_0 : i32
    %c15_i32 = arith.constant 15 : i32
    %2 = arith.minsi %1, %c15_i32 : i32
    %c0_i32 = arith.constant 0 : i32
    %c0_i32_1 = arith.constant 0 : i32
    %c0_i32_2 = arith.constant 0 : i32
    return %arg0, %2, %c0_i32, %c0_i32_1 : i32, i32, i32, i32
  }
  func.func @transform_3(%arg0: i32, %arg1: i32, %arg2: i32) -> (i32, i32, i32, i32) {
    %c0_i32 = arith.constant 0 : i32
    %c0_i32_0 = arith.constant 0 : i32
    %c0_i32_1 = arith.constant 0 : i32
    %c0_i32_2 = arith.constant 0 : i32
    return %c0_i32, %c0_i32_0, %c0_i32_1, %arg2 : i32, i32, i32, i32
  }
  func.func @transform_4(%arg0: i32, %arg1: i32, %arg2: i32) -> (i32, i32) {
    %c0_i32 = arith.constant 0 : i32
    %c0_i32_0 = arith.constant 0 : i32
    return %c0_i32, %arg2 : i32, i32
  }
  func.func @transform_5(%arg0: i32, %arg1: i32, %arg2: i32) -> (i32, i32) {
    %c0_i32 = arith.constant 0 : i32
    %c0_i32_0 = arith.constant 0 : i32
    return %c0_i32, %arg2 : i32, i32
  }
  func.func @transform_6(%arg0: i32, %arg1: i32, %arg2: i32) -> (i32, i32, i32, i32) {
    %c0_i32 = arith.constant 0 : i32
    %c0_i32_0 = arith.constant 0 : i32
    return %arg0, %arg1, %c0_i32, %arg2 : i32, i32, i32, i32
  }
}

</mosaic_0001>

<bundles_post_ra>
// kernel: tpu_custom_call.1
= control target key start
LH: loop header
LB: loop body
LE: loop exit
PB: predicated region body
PF: predicated region fallthrough
CT: control target
= control target key end

     0   :  { %s6270_s0 = inlined_call_operand.hbm [shape: bf16[2,16,16,32], index: 0, kind: input, shape index: {}]   ;;  %s6271_s1 = inlined_call_operand.hbm [shape: bf16[2,16,16,32], index: 1, kind: input, shape index: {}]   ;;  %s6272_s2 = inlined_call_operand.hbm [shape: bf16[2,16,16,32], index: 2, kind: input, shape index: {}]   ;;  %s6273_s3 = inlined_call_operand.hbm [shape: bf16[3,3,32,64], index: 3, kind: input, shape index: {}]   ;;  %s6274_s4 = inlined_call_operand.vmem [shape: f32[1,64], index: 4, kind: input, shape index: {}]   ;;  %s6275_s5 = inlined_call_operand.vmem [shape: f32[1,64], index: 5, kind: input, shape index: {}]   ;;  %s6276_s6 = inlined_call_operand.hbm [shape: f32[2,16,16,64], index: 6, kind: output, shape index: {}]  }
   0x1   :  { %6316 = sst [smem:[#allocation46_spill]] %s6271_s1 }
   0x2   :  { %6317 = sst [smem:[#allocation47_spill]] %s6272_s2 }
   0x3   :  { %6318 = sst [smem:[#allocation48_spill]] %s6273_s3 }
   0x4   :  { %6319 = sst [smem:[#allocation49_spill]] %s6274_s4 }
   0x5   :  { %6320 = sst [smem:[#allocation50_spill]] %s6275_s5 }
   0x6   :  { %6321 = sst [smem:[#allocation51_spill]] %s6276_s6 }
   0x7   :  { %11 = vsyncpa [#allocation4], 0 }
   0x8   :  { %13 = vsyncpa [#allocation4 + $0x1], 0 }
   0x9   :  { %14 = vsyncpa [#allocation7], 0 }
   0xa   :  { %16 = vsyncpa [#allocation7 + $0x1], 0 }
   0xb   :  { %17 = vsyncpa [#allocation10], 0 }
   0xc   :  { %18 = vsyncpa [#allocation5], 0 }
   0xd   :  { %20 = vsyncpa [#allocation5 + $0x1], 0  ;;  %s4881_s21 = smov 0   ;;  %s4883_s22 = smov 0  }
   0xe   :  { %s4885_s23 = smov 0   ;;  %s4887_s24 = smov 0  }
   0xf   :  { %s4889_s25 = smov 0   ;;  %s4891_s26 = smov 0  }
  0x10   :  { %s4893_s27 = smov 0   ;;  %s4895_s28 = smov 0  }
  0x11   :  { %s4897_s29 = smov 0   ;;  %s4899_s30 = smov 0  }
  0x12   :  { %s4901_s7 = smov 0   ;;  %s4903_s8 = smov 0  }
  0x13   :  { %s4905_s9 = smov 0   ;;  %s4907_s10 = smov 0  }
  0x14 LB: > { %6322 = sst [smem:[#allocation17_spill]] %s4795_s24  ;;  %s3738_s11 = sadd.s32 4294967294, %s4835_s10   ;;  %s4835_s10 = sphi %s4907_s10, %s26_s10   ;;  %s4831_s9 = sphi %s4905_s9, %s6454_s9   ;;  %s4827_s8 = sphi %s4903_s8, %s6453_s8   ;;  %s4823_s7 = sphi %s4901_s7, %s6452_s7   ;;  %s4819_s30 = sphi %s4899_s30, %s6451_s30   ;;  %s4815_s29 = sphi %s4897_s29, %s6461_s29   ;;  %s4811_s28 = sphi %s4895_s28, %s6460_s28   ;;  %s4807_s27 = sphi %s4893_s27, %s6449_s27   ;;  %s4803_s26 = sphi %s4891_s26, %s6459_s26   ;;  %s4799_s25 = sphi %s4889_s25, %s6458_s25   ;;  %s4795_s24 = sphi %s4887_s24, %s6448_s24   ;;  %s4791_s23 = sphi %s4885_s23, %s6457_s23   ;;  %s4787_s22 = sphi %s4883_s22, %s6456_s22   ;;  %s4783_s21 = sphi %s4881_s21, %s6455_s21  }
  0x15   : > { %6323 = sst [smem:[#allocation18_spill]] %s4799_s25  ;;  %s41_s12 = sadd.s32 1, %s4827_s8 }
  0x16   : > { %6324 = sst [smem:[#allocation19_spill]] %s4811_s28  ;;  %p43_p0 = scmp.ge.s32.totalorder %s41_s12, 2 }
  0x17   : > { %6325 = sst [smem:[#allocation20_spill]] %s4819_s30  ;;  %s45_s13 = sadd.s32 1, %s4831_s9 }
  0x18   : > { %6326 = sst [smem:[#allocation21_spill]] %s4823_s7  ;;  %p6281_p1 = scmp.eq.s32.totalorder %s4835_s10, 0 }
  0x19   : > { %6327 = sst [smem:[#allocation22_spill]] %s4827_s8  ;;  %s6463_s12 = smov (%p43_p0, %s41_s12), 0 }
  0x1a   : > { %6328 = sst [smem:[#allocation23_spill]] %s4831_s9  ;;  %s6465_s13 = smov (!%p43_p0, %s45_s13), %s4831_s9 }
  0x1b   : > { %6329 = sst [smem:[#allocation24_spill]] %s6463_s12  ;;  %p6282_p2 = scmp.ne.s32.totalorder %s4803_s26, %s4799_s25 }
  0x1c   : > { %p6283_p3 = scmp.ne.s32.totalorder %s4799_s25, %s4795_s24  ;;  %p251_p4 = scmp.eq.s32.totalorder %s3738_s11, 3 }
  0x1d   : > { %p4972_p5 = por %p6282_p2, %p6281_p1  ;;  %p6280_p7 = scmp.lt.s32.totalorder %s4835_s10, 4 }
  0x1e   : > { %p4979_p6 = por %p251_p4, %p6283_p3  ;;  %s4985_s18 = sshll.u32 %s4831_s9, 5 }
  0x1f   : > { %s325_s19 = sand.u32 1, %s4835_s10   ;;  %s327_s20 = sand.u32 1, %s4803_s26  }
  0x20   : > { %s6331_s17 = scalar_select %p4979_p6, 1, 0 }
  0x21   : > { %s3756_s14 = sshll.u32 %s327_s20, 6  ;;  %s3967_s11 = sshll.u32 %s4827_s8, 4 }
  0x22   : > { %6332 = sst [smem:[#allocation25_spill]] %s6331_s17  ;;  %s336_s15 = sadd.s32 %s3967_s11, %s4985_s18 }
  0x23   : > { %s3760_s6 = sshll.u32 %s336_s15, 6  ;;  %s329_s7 = scalar_lea.vmem [#allocation6], %s3756_s14 }
  0x24   : > { %s339_s5 = sshll.u32 %s329_s7, 4  ;;  %s6333_s1 = sld [smem:[#allocation46_spill]]  ;;  %s4996_s5 = int_to_ptr.vmem [resolvable:$true] %s339_s5 }
  0x25   : > { %p5002_p8 = pnand %p6280_p7, %p4972_p5  ;;  %s5006_s7 = scalar_lea.sflag [#allocation7], %s325_s19 }
  0x27   : > { %p4561_p10 = pneg %p5002_p8 }
  0x2a   : > { %s4994_s2 = scalar_lea.hbm %s6333_s1, %s3760_s6  ;;  %s4564_s30 = scalar_lea.hbm %s6333_s1, 4096 }
  0x2b   : > { %s4559_s14 = scalar_lea.hbm %s4994_s2, 1024  ;;  %p4565_p13 = scmp.lt.u32.totalorder %s4994_s2, %s6333_s1 }
  0x2c   : > { %p4560_p9 = scmp.ne.s32.totalorder %s4994_s2, %s4559_s14  ;;  %p4566_p0 = scmp.lt.u32.totalorder %s4564_s30, %s4559_s14 }
  0x2d   : > { %p4568_p5 = scmp.lt.u32.totalorder %s4559_s14, %s4994_s2 }
  0x2e   : > { %p4562_p11 = pnand %p4561_p10, %p4560_p9  ;;  %p4567_p4 = por %p4566_p0, %p4565_p13 }
  0x30   : > { %p4563_p12 = pneg %p4562_p11  ;;  %p4569_p7 = por %p4568_p5, %p4567_p4 }
  0x32   : > { %p4570_p1 = pnand %p4569_p7, %p4563_p12 }
  0x34   : > { %4573 = shalt.err (!%p4570_p1)
}
  0x35   : > { %s4574_s19 = scalar_lea.vmem %s4996_s5, 1024  ;;  %s4837_s11 = smov [#allocation6]  }
  0x36   : > { %p4575_p9 = scmp.ne.s32.totalorder %s4996_s5, %s4574_s19  ;;  %s4579_s4 = sshll.u32 %s4837_s11, 4  ;;  %s4580_s4 = int_to_ptr.vmem [resolvable:$false] %s4579_s4 }
  0x37   : > { %s4581_s6 = scalar_lea.vmem %s4580_s4, 2048  ;;  %p4582_p3 = scmp.lt.s32.totalorder %s4996_s5, %s4580_s4 }
  0x38   : > { %p4577_p11 = pnand %p4575_p9, %p4561_p10  ;;  %p4583_p13 = scmp.lt.s32.totalorder %s4581_s6, %s4574_s19 }
  0x3a   : > { %p4578_p2 = pneg %p4577_p11  ;;  %p4584_p0 = por %p4583_p13, %p4582_p3 }
  0x3c   : > { %p4585_p4 = pnand %p4584_p0, %p4578_p2 }
  0x3e   : > { %4588 = shalt.err (!%p4585_p4)
}
  0x3f   : > { %s6284_s14 = smov 64   ;;  %s6286_s30 = smov 4  }
  0x40   : > { %4393 = dma.hbm_to_vmem [thread:$0]  (!%p5002_p8), %s4994_s2, 1024, %s4996_s5, %s5006_s7, %s6284_s14, %s6284_s14, %s6286_s30  }
  0x41   : > { %s5038_s15 = sadd.s32 4294967295, %s4835_s10   ;;  %p3745_p1 = scmp.ge.s32.totalorder %s4835_s10, 1 }
  0x42   : > { %p6290_p2 = scmp.eq.s32.totalorder %s5038_s15, 0  ;;  %p245_p3 = scmp.eq.s32.totalorder %s5038_s15, 3 }
  0x43   : > { %p258_p7 = scmp.lt.s32.totalorder %s4835_s10, 5  ;;  %p6335_p10 = scmp.ne.s32.totalorder %s4799_s25, %s4795_s24 }
  0x44   : > { %p6338_p5 = scmp.ne.s32.totalorder %s4803_s26, %s4799_s25  ;;  %s4840_s5 = smov [#allocation9]  }
  0x45   : > { %p5049_p12 = por %p6335_p10, %p6290_p2  ;;  %p5060_p8 = pnand %p3745_p1, %p258_p7 }
  0x46   : > { %p5056_p9 = por %p245_p3, %p6338_p5  ;;  %s272_s19 = sshll.u32 %s4840_s5, 4  ;;  %s273_s19 = int_to_ptr.vmem [resolvable:$true] %s272_s19 }
  0x47   : > { %s6336_s16 = scalar_select %p5049_p12, 1, 0 }
  0x48   : > { %s6339_s20 = scalar_select %p5056_p9, 1, 0 }
  0x49   : > { %6337 = sst [smem:[#allocation26_spill]] %s6336_s16  ;;  %p4383_p11 = pneg %p5060_p8 }
  0x4a   : > { %6340 = sst [smem:[#allocation27_spill]] %s6339_s20 }
  0x4b   : > { %s6341_s2 = scalar_select %p5060_p8, 1, 0 }
  0x4c   : > { %p5068_p13 = pnand %p4383_p11, %p6290_p2  ;;  %s6343_s3 = sld [smem:[#allocation48_spill]] }
  0x4e   : > { %p4591_p1 = pneg %p5068_p13 }
  0x52   : > { %s4589_s14 = scalar_lea.hbm %s6343_s3, 2304 }
  0x53   : > { %p4590_p4 = scmp.ne.s32.totalorder %s6343_s3, %s4589_s14  ;;  %p4596_p10 = scmp.lt.u32.totalorder %s4589_s14, %s6343_s3 }
  0x55   : > { %p4592_p3 = pnand %p4591_p1, %p4590_p4 }
  0x57   : > { %p4593_p7 = pneg %p4592_p3 }
  0x59   : > { %p4598_p5 = pnand %p4596_p10, %p4593_p7 }
  0x5b   : > { %4601 = shalt.err (!%p4598_p5)
}
  0x5c   : > { %s4602_s24 = scalar_lea.vmem %s273_s19, 2304  ;;  %p4610_p6 = scmp.lt.s32.totalorder %s273_s19, %s273_s19 }
  0x5d   : > { %p4603_p11 = scmp.ne.s32.totalorder %s273_s19, %s4602_s24  ;;  %p4611_p9 = scmp.lt.s32.totalorder %s4602_s24, %s4602_s24 }
  0x5f   : > { %p4605_p2 = pnand %p4603_p11, %p4591_p1  ;;  %p4612_p12 = por %p4611_p9, %p4610_p6 }
  0x61   : > { %p4606_p0 = pneg %p4605_p2 }
  0x63   : > { %p4613_p8 = pnand %p4612_p12, %p4606_p0 }
  0x65   : > { %4616 = shalt.err (!%p4613_p8)
}
  0x66   : > { %s6344_s1 = smov 4   ;;  %s6345_s30 = smov 64  }
  0x67   : > { %4386 = dma.hbm_to_vmem [thread:$0]  (!%p5068_p13), %s6343_s3, 2304, %s273_s19, [#allocation10], %s6345_s30, %s6345_s30, %s6344_s1  }
  0x68   : > { %p6346_p6 = scmp.ge.s32.totalorder %s6465_s13, 2  ;;  %s3739_s24 = sshll.u32 %s4827_s8, 3 }
  0x69   : > { %s3741_s17 = sshll.u32 %s6463_s12, 3  ;;  %s3740_s14 = sadd.s32 4294967295, %s3739_s24 }
  0x6a   : > { %s6467_s13 = smov (%p6346_p6, %s6465_s13), 0  ;;  %s3742_s11 = sadd.s32 4294967295, %s3741_s17 }
  0x6b   : > { %6347 = sst [smem:[#allocation28_spill]] %s6467_s13  ;;  %p51_p2 = scmp.gt.s32.totalorder %s3740_s14, 0 }
  0x6c   : > { %p55_p12 = scmp.gt.s32.totalorder %s3742_s11, 0  ;;  %s5101_s5 = ssub.s32 %s4831_s9, %s6467_s13 }
  0x6d   : > { %s62_s19 = sadd.s32 1, %s4815_s29  ;;  %s6469_s14 = smov (!%p51_p2, %s3740_s14), 0 }
  0x6e   : > { %s6471_s11 = smov (!%p55_p12, %s3742_s11), 0  ;;  %p69_p9 = scmp.ne.s32.totalorder %s4815_s29, %s4811_s28 }
  0x6f   : > { %p75_p8 = scmp.ne.s32.totalorder %s4811_s28, %s4807_s27  ;;  %s58_s4 = ssub.s32 %s6469_s14, %s6471_s11 }
  0x70   : > { %s6348_s6 = ssub.s32 %s4827_s8, %s6463_s12  ;;  %s59_s20 = sor.u32 %s58_s4, %s5101_s5 }
  0x71   : > { %s87_s3 = sor.u32 %s6348_s6, %s5101_s5  ;;  %p6349_p13 = scmp.eq.s32.totalorder %s4835_s10, 0 }
  0x72   : > { %p60_p4 = scmp.eq.s32.totalorder %s59_s20, 0  ;;  %p6351_p1 = scmp.eq.s32.totalorder %s5038_s15, 0 }
  0x73   : > { %p5115_p0 = por %p6349_p13, %p69_p9  ;;  %p88_p7 = scmp.eq.s32.totalorder %s87_s3, 0 }
  0x74   : > { %p5121_p3 = por %p6351_p1, %p75_p8  ;;  %s5125_s27 = sadd.s32 8, %s3739_s24 }
  0x75   : > { %s5128_s11 = scalar_select %p60_p4, %s4815_s29, %s62_s19  }
  0x76   : > { %s6352_s13 = scalar_select %p5121_p3, 1, 0 }
  0x77   : > { %6354 = sst [smem:[#allocation30_spill]] %s5128_s11  ;;  %s6355_s4 = sadd.s32 1, %s4803_s26 }
  0x78   : > { %6353 = sst [smem:[#allocation29_spill]] %s6352_s13  ;;  %s5136_s12 = sadd.s32 8, %s3741_s17 }
  0x79   : > { %s5133_s6 = scalar_select %p88_p7, %s4803_s26, %s6355_s4  }
  0x7a   : > { %s298_s20 = sand.u32 1, %s4815_s29   ;;  %s3753_s8 = sshll.u32 %s6469_s14, 1 }
  0x7b   : > { %s3750_s9 = sshll.u32 %s298_s20, 3  ;;  %s312_s25 = sadd.s32 %s4985_s18, %s3753_s8 }
  0x7c   : > { %s302_s3 = scalar_lea.vmem [#allocation3], %s3750_s9  ;;  %s3755_s28 = sshll.u32 %s312_s25, 6 }
  0x7d   : > { %s315_s13 = sshll.u32 %s302_s3, 4  ;;  %s5146_s11 = scalar_lea.hbm %s6270_s0, %s3755_s28  ;;  %s5141_s13 = int_to_ptr.vmem [resolvable:$true] %s315_s13 }
  0x7e   : > { %p6356_p11 = scmp.lt.s32.totalorder %s4835_s10, 4  ;;  %s5156_s25 = scalar_lea.sflag [#allocation4], %s298_s20 }
  0x7f   : > { %s4617_s8 = scalar_lea.hbm %s5146_s11, 128  ;;  %s4622_s16 = scalar_lea.hbm %s6270_s0, 4096 }
  0x80   : > { %p5152_p6 = pnand %p6356_p11, %p5115_p0  ;;  %p4618_p2 = scmp.ne.s32.totalorder %s5146_s11, %s4617_s8 }
  0x81   : > { %p4623_p13 = scmp.lt.u32.totalorder %s5146_s11, %s6270_s0  ;;  %p4624_p0 = scmp.lt.u32.totalorder %s4622_s16, %s4617_s8 }
  0x82   : > { %p4619_p12 = pneg %p5152_p6  ;;  %p4626_p1 = scmp.lt.u32.totalorder %s4617_s8, %s5146_s11 }
  0x83   : > { %p4625_p4 = por %p4624_p0, %p4623_p13 }
  0x84   : > { %p4620_p9 = pnand %p4619_p12, %p4618_p2 }
  0x85   : > { %p4627_p7 = por %p4626_p1, %p4625_p4 }
  0x86   : > { %p4621_p8 = pneg %p4620_p9 }
  0x88   : > { %p4628_p11 = pnand %p4627_p7, %p4621_p8 }
  0x8a   : > { %4631 = shalt.err (!%p4628_p11)
}
  0x8b   : > { %s4632_s20 = scalar_lea.vmem %s5141_s13, 128  ;;  %s4841_s3 = smov [#allocation3]  }
  0x8c   : > { %p4633_p2 = scmp.ne.s32.totalorder %s5141_s13, %s4632_s20  ;;  %s4637_s24 = sshll.u32 %s4841_s3, 4  ;;  %s4638_s24 = int_to_ptr.vmem [resolvable:$false] %s4637_s24 }
  0x8d   : > { %s4639_s19 = scalar_lea.vmem %s4638_s24, 256  ;;  %p4640_p10 = scmp.lt.s32.totalorder %s5141_s13, %s4638_s24 }
  0x8e   : > { %p4635_p9 = pnand %p4633_p2, %p4619_p12  ;;  %p4641_p13 = scmp.lt.s32.totalorder %s4639_s19, %s4632_s20 }
  0x90   : > { %p4636_p5 = pneg %p4635_p9  ;;  %p4642_p0 = por %p4641_p13, %p4640_p10 }
  0x92   : > { %p4643_p4 = pnand %p4642_p0, %p4636_p5 }
  0x94   : > { %4646 = shalt.err (!%p4643_p4)
}
  0x95   : > { %4390 = dma.hbm_to_vmem [thread:$0]  (!%p5152_p6), %s5146_s11, 128, %s5141_s13, %s5156_s25, %s6345_s30, %s6345_s30, %s6344_s1  }
  0x96   : > { %s126_s17 = sadd.s32 1, %s4791_s23  ;;  %p6358_p10 = scmp.lt.s32.totalorder %s5125_s27, 15 }
  0x97   : > { %p6359_p5 = scmp.lt.s32.totalorder %s5136_s12, 15  ;;  %p133_p12 = scmp.ne.s32.totalorder %s4791_s23, %s4787_s22 }
  0x98   : > { %s6473_s27 = smov (!%p6358_p10, %s5125_s27), 15  ;;  %p139_p8 = scmp.ne.s32.totalorder %s4787_s22, %s4783_s21 }
  0x99   : > { %s6475_s12 = smov (!%p6359_p5, %s5136_s12), 15  ;;  %s351_s28 = sand.u32 1, %s4791_s23  }
  0x9a   : > { %s122_s8 = ssub.s32 %s6473_s27, %s6475_s12  ;;  %p6360_p1 = scmp.eq.s32.totalorder %s4835_s10, 0 }
  0x9b   : > { %s123_s9 = sor.u32 %s122_s8, %s5101_s5  ;;  %p6361_p2 = scmp.eq.s32.totalorder %s5038_s15, 0 }
  0x9c   : > { %p135_p7 = por %p133_p12, %p6360_p1  ;;  %p124_p11 = scmp.eq.s32.totalorder %s123_s9, 0 }
  0x9d   : > { %p5204_p9 = por %p139_p8, %p6361_p2  ;;  %s3761_s13 = sshll.u32 %s351_s28, 3 }
  0x9e   : > { %s3763_s11 = sshll.u32 %s6473_s27, 1  ;;  %s353_s20 = scalar_lea.vmem [#allocation8], %s3761_s13 }
  0x9f   : > { %s6362_s16 = scalar_select %p5204_p9, 1, 0 }
  0xa0   : > { %s5209_s25 = scalar_select %p124_p11, %s4791_s23, %s126_s17  }
  0xa1   : > { %s363_s14 = sadd.s32 %s3763_s11, %s4985_s18  ;;  %s366_s21 = sshll.u32 %s353_s20, 4  ;;  %s5217_s21 = int_to_ptr.vmem [resolvable:$true] %s366_s21 }
  0xa2   : > { %s3765_s4 = sshll.u32 %s363_s14, 6  ;;  %s6363_s24 = sld [smem:[#allocation47_spill]] }
  0xa3   : > { %p6365_p6 = scmp.lt.s32.totalorder %s4835_s10, 4 }
  0xa5   : > { %p5221_p13 = pnand %p6365_p6, %p135_p7 }
  0xa7   : > { %p4649_p4 = pneg %p5221_p13 }
  0xa8   : > { %s6364_s19 = smov %s6363_s24  ;;  %s5215_s5 = scalar_lea.hbm %s6363_s24, %s3765_s4 }
  0xa9   : > { %s4647_s18 = scalar_lea.hbm %s5215_s5, 128  ;;  %s4652_s28 = scalar_lea.hbm %s6364_s19, 4096 }
  0xaa   : > { %p4648_p0 = scmp.ne.s32.totalorder %s5215_s5, %s4647_s18  ;;  %p4653_p12 = scmp.lt.u32.totalorder %s5215_s5, %s6364_s19 }
  0xab   : > { %p4654_p8 = scmp.lt.u32.totalorder %s4652_s28, %s4647_s18  ;;  %p4656_p7 = scmp.lt.u32.totalorder %s4647_s18, %s5215_s5 }
  0xac   : > { %p4650_p10 = pnand %p4649_p4, %p4648_p0 }
  0xad   : > { %p4655_p1 = por %p4654_p8, %p4653_p12 }
  0xae   : > { %p4651_p5 = pneg %p4650_p10 }
  0xaf   : > { %p4657_p11 = por %p4656_p7, %p4655_p1 }
  0xb1   : > { %p4658_p2 = pnand %p4657_p11, %p4651_p5 }
  0xb3   : > { %4661 = shalt.err (!%p4658_p2)
}
  0xb4   : > { %s4662_s11 = scalar_lea.vmem %s5217_s21, 128  ;;  %s4842_s14 = smov [#allocation8]  }
  0xb5   : > { %p4663_p6 = scmp.ne.s32.totalorder %s5217_s21, %s4662_s11  ;;  %s4667_s4 = sshll.u32 %s4842_s14, 4  ;;  %s4668_s4 = int_to_ptr.vmem [resolvable:$false] %s4667_s4 }
  0xb6   : > { %s4669_s20 = scalar_lea.vmem %s4668_s4, 256  ;;  %p4670_p9 = scmp.lt.s32.totalorder %s5217_s21, %s4668_s4 }
  0xb7   : > { %p4665_p0 = pnand %p4663_p6, %p4649_p4  ;;  %p4671_p12 = scmp.lt.s32.totalorder %s4669_s20, %s4662_s11 }
  0xb9   : > { %p4666_p10 = pneg %p4665_p0  ;;  %p4672_p8 = por %p4671_p12, %p4670_p9 }
  0xbb   : > { %p4673_p1 = pnand %p4672_p8, %p4666_p10 }
  0xbd   : > { %4676 = shalt.err (!%p4673_p1)
}
  0xbe   : > { %4396 = dma.hbm_to_vmem [thread:$0]  (!%p5221_p13), %s5215_s5, 128, %s5217_s21, %s5006_s7, %s6345_s30, %s6345_s30, %s6344_s1  }
  0xbf   : > { %p6367_p4 = scmp.ne.s32.totalorder %s6341_s2, 0 }
  0xc1   : > { %378 = sbr.rel (%p6367_p4) target bundleno = 692 (0x2b4), region = 44 }
  0xc8   : > { %s6368_s3 = sld [smem:[#allocation19_spill]] }
  0xce   : > { %s380_s24 = sand.u32 1, %s6368_s3  }
  0xcf   : > { %s5257_s18 = sshll.u32 %s380_s24, 3  ;;  %s381_s17 = scalar_lea.sflag [#allocation4], %s380_s24 }
  0xd0   : > { %s384_s8 = scalar_lea.vmem [#allocation3], %s5257_s18 }
  0xd1   : > { %4762 = dma.done.wait (%p5121_p3), %s381_s17, 128  }
  0xd2   : > { %4764 = vsyncadd (%p5121_p3), %s381_s17, 4294967168  ;;  %s6370_s27 = sld [smem:[#allocation18_spill]]  ;;  %s6371_s28 = sld [smem:[#allocation26_spill]] }
  0xd3   : > { %s389_s7 = sand.u32 1, %s5038_s15  }
  0xd4   : > { %s390_s30 = scalar_lea.sflag [#allocation7], %s389_s7 }
  0xd8   : > { %s5266_s1 = sand.u32 1, %s6370_s27   ;;  %p6372_p9 = scmp.ne.s32.totalorder %s6371_s28, 0 }
  0xd9   : > { %s3768_s2 = sshll.u32 %s5266_s1, 6 }
  0xda   : > { %s5269_s21 = scalar_lea.vmem [#allocation6], %s3768_s2 }
  0xdb   : > { %4766 = dma.done.wait (%p6372_p9), %s390_s30, 1024  }
  0xdc   : > { %4768 = vsyncadd (%p6372_p9), %s390_s30, 4294966272  ;;  %s400_s5 = sand.u32 1, %s4787_s22   ;;  %p6373_p3 = scmp.ne.s32.totalorder %s6362_s16, 0 }
  0xdd   : > { %s5276_s9 = sshll.u32 %s400_s5, 3 }
  0xde   : > { %s402_s13 = scalar_lea.vmem [#allocation8], %s5276_s9 }
  0xdf   : > { %4770 = dma.done.wait (%p6373_p3), %s390_s30, 128  }
  0xe0   : > { %4772 = vsyncadd (%p6373_p3), %s390_s30, 4294967168  ;;  %p6374_p13 = scmp.eq.s32.totalorder %s5038_s15, 0 }
  0xe2   : > { %4774 = dma.done.wait (%p6374_p13), [#allocation10], 2304   ;;  %p6375_p5 = pmov %p6374_p13 }
  0xe3   : > { %s6376_s11 = sld [smem:[#allocation20_spill]]  ;;  %vm556_vm0 = vcmask 253952   ;;  %vm557_vm1 = vsmask.f32 256  ;;  %v4522_v1 = vld [vmem:[#allocation9 + $0x10] sm:$0xff]   ;;  %v4523_v3 = vld [vmem:[#allocation9 + $0x40] sm:$0xff]  }
  0xe4   : > { %4776 = vsyncadd (%p6375_p5), [#allocation10], 4294964992  ;;  %vm485_vm3 = vcmask 257024   ;;  %4059 = vmatprep.subr.bf16.mxu1 %v4522_v1  ;;  %v4524_v4 = vld [vmem:[#allocation9 + $0x18] sm:$0xff]   ;;  %4139 = vmatprep.subr.bf16.mxu0 %v4523_v3  ;;  %v4525_v6 = vld [vmem:[#allocation9 + $0x48] sm:$0xff]   ;;  %vm852_vm5 = vcmask 261120  }
  0xe5   : > { %vm5289_vm2 = vmand %vm556_vm0, %vm557_vm1  ;;  %4060 = vmatpush3.bf16.msra.mxu1 %v4522_v1  ;;  %4140 = vmatpush3.bf16.msra.mxu0 %v4523_v3  ;;  %v468_v7 = vld [vmem:[%s5269_s21] sm:$0xf]  ;;  %v469_v8 = vld [vmem:[%s5269_s21 + $0x4] sm:$0xf]  ;;  %vm1155_vm6 = vsmask.f32 3328 }
  0xe6   : > { %4061 = vmatprep.subr.bf16.mxu1 %v4524_v4  ;;  %v502_v9 = vld [vmem:[%s384_s8] sm:$0xf]  ;;  %4141 = vmatprep.subr.bf16.mxu0 %v4525_v6  ;;  %486 = vst.msk [vmem:[#allocation2 + $0x1c] sm:$0xf] %vm485_vm3, %v468_v7  ;;  %487 = vst.msk [vmem:[#allocation2 + $0x20] sm:$0xf] %vm485_vm3, %v469_v8 }
  0xe7   : > { %v503_v10 = vld [vmem:[%s384_s8 + $0x4] sm:$0xf]  ;;  %v470_v14 = vld [vmem:[%s5269_s21 + $0x8] sm:$0xf]  ;;  %v5314_v15 = vld [vmem:[#allocation9 + $0x50] sm:$0xff]   ;;  %vm523_vm11 = vcmask 257027  }
  0xe8   : > { %v5308_v12 = vld [vmem:[#allocation9] sm:$0xff]   ;;  %v471_v16 = vld [vmem:[%s5269_s21 + $0xc] sm:$0xf]  ;;  %488 = vst.msk [vmem:[#allocation2 + $0x30] sm:$0xf] %vm485_vm3, %v470_v14  ;;  %s6438_s20 = sld [smem:[#allocation49_spill]] }
  0xe9   : > { %p504_p7 = scmp.gt.s32.totalorder %s6376_s11, 0  ;;  %p514_p11 = scmp.lt.s32.totalorder %s6376_s11, 1  ;;  %4062 = vmatpush3.bf16.msra.mxu1 %v4524_v4  ;;  %4142 = vmatpush3.bf16.msra.mxu0 %v4525_v6  ;;  %489 = vst.msk [vmem:[#allocation2 + $0x34] sm:$0xf] %vm485_vm3, %v471_v16  ;;  %v472_v17 = vld [vmem:[%s5269_s21 + $0x10] sm:$0xf] }
  0xea   : > { %4079 = vmatprep.subr.bf16.mxu1 %v5308_v12  ;;  %v473_v18 = vld [vmem:[%s5269_s21 + $0x14] sm:$0xf]  ;;  %v474_v19 = vld [vmem:[%s5269_s21 + $0x18] sm:$0xf]  ;;  %4159 = vmatprep.subr.bf16.mxu0 %v5314_v15  ;;  %490 = vst.msk [vmem:[#allocation2 + $0x44] sm:$0xf] %vm485_vm3, %v472_v17 }
  0xeb   : > { %s505_s14 = scalar_select %p504_p7, 1, 0  ;;  %491 = vst.msk [vmem:[#allocation2 + $0x48] sm:$0xf] %vm485_vm3, %v473_v18  ;;  %v475_v20 = vld [vmem:[%s5269_s21 + $0x1c] sm:$0xf] }
  0xec   : > { %492 = vst.msk [vmem:[#allocation2 + $0x58] sm:$0xf] %vm485_vm3, %v474_v19  ;;  %493 = vst.msk [vmem:[#allocation2 + $0x5c] sm:$0xf] %vm485_vm3, %v475_v20  ;;  %v562_v21 = vld [vmem:[#allocation2 + $0x24] sm:$0x1] }
  0xed   : > { %v506_v0 = vstv %s505_s14  ;;  %s5332_s15 = scalar_select %p514_p11, 1, 0  ;;  %v563_v22 = vsel %vm5289_vm2, 0, %v562_v21  ;;  %v1529_v23 = vld [vmem:[#allocation2 + $0x1c] sm:$0xf]  ;;  %v4535_v60 = vld [vmem:[#allocation9 + $0x58] sm:$0xff]  }
  0xee   : > { %vm5293_vm4 = vcmp.eq.s32.totalorder %v506_v0, 1  ;;  %v1530_v24 = vld [vmem:[#allocation2 + $0x20] sm:$0xf]  ;;  %564 = vst [vmem:[#allocation2 + $0x24] sm:$0x1] %v563_v22  ;;  %v1558_v25 = vshrl.u32 %v1529_v23, 16 }
  0xef   : > { %v508_v11 = vsel %vm5293_vm4, %v502_v9, 0  ;;  %v509_v13 = vsel %vm5293_vm4, %v503_v10, 0  ;;  %v1561_v26 = vshll.u32 %v1529_v23, 16  ;;  %v1567_v27 = vshrl.u32 %v1530_v24, 16  ;;  %v1532_v39 = vld [vmem:[#allocation2 + $0x30] sm:$0xf] }
  0xf0   : > { %510 = vst.msk [vmem:[#allocation2 + $0x8] sm:$0xf] %vm485_vm3, %v508_v11  ;;  %511 = vst.msk [vmem:[#allocation2 + $0xc] sm:$0xf] %vm485_vm3, %v509_v13  ;;  %v1570_v28 = vshll.u32 %v1530_v24, 16  ;;  %v3860_v30 = vcombine.low %v1529_v23, %v1530_v24  ;;  %v5337_v35 = vrot.slane %v1558_v25, 7 }
  0xf1   : > { %v1569_v36 = vrot.slane %v1567_v27, 7  ;;  %v1533_v42 = vld [vmem:[#allocation2 + $0x34] sm:$0xf]  ;;  %v1580_v43 = vshrl.u32 %v1532_v39, 16  ;;  %v1583_v44 = vshll.u32 %v1532_v39, 16  ;;  %s6439_s24 = sld [smem:[#allocation50_spill]] }
  0xf2   : > { %6381 = vst [vmem:[#allocation31_spill] sm:$0xff] %v5337_v35  ;;  %4143 = vmatprep.mubr.msk.bf16.mxu0 %vm852_vm5, %v3860_v30  ;;  %v5343_v45 = vor.u32 %v1561_v26, %v5337_v35  ;;  %v593_v49 = vld [vmem:[#allocation2 + $0x1c] sm:$0xf]  ;;  %v1589_v53 = vshrl.u32 %v1533_v42, 16  ;;  %v594_v54 = vld [vmem:[#allocation2 + $0x20] sm:$0xf]  ;;  %v3861_v57 = vcombine.low %v1532_v39, %v1533_v42 }
  0xf3   : > { %v5346_v47 = vor.u32 %v1570_v28, %v1569_v36  ;;  %v5353_v52 = vrot.slane %v1580_v43, 7  ;;  %v1592_v56 = vshll.u32 %v1533_v42, 16  ;;  %v643_v58 = vshrl.u32 %v593_v49, 16  ;;  %v5357_v59 = vld [vmem:[#allocation2 + $0x44] sm:$0xf]  ;;  %v4538_v9 = vld [vmem:[#allocation9 + $0x8] sm:$0xff]  }
  0xf4   : > { %6382 = vst [vmem:[#allocation32_spill] sm:$0xff] %v5343_v45  ;;  %6385 = vst [vmem:[#allocation35_spill] sm:$0xff] %v5357_v59  ;;  %v1591_v63 = vrot.slane %v1589_v53, 7  ;;  %v646_v0 = vshll.u32 %v593_v49, 16  ;;  %v5363_v1 = vld [vmem:[#allocation2 + $0x48] sm:$0xf]  ;;  %4144 = vmatmul.mubr.msk.bf16.vlgmr.msra.gmra.mrb[0].mxu0 %vm852_vm5, %v3861_v57  ;;  %v3781_v6 = vcombine.low %v593_v49, %v594_v54 }
  0xf5   : > { %6383 = vst [vmem:[#allocation33_spill] sm:$0xff] %v5346_v47  ;;  %6384 = vst [vmem:[#allocation34_spill] sm:$0xff] %v5353_v52  ;;  %v5360_v61 = vor.u32 %v1583_v44, %v5353_v52  ;;  %v5366_v3 = vrot.slane %v643_v58, 7  ;;  %v652_v4 = vshrl.u32 %v594_v54, 16  ;;  %v655_v5 = vshll.u32 %v594_v54, 16  ;;  %4160 = vmatpush3.bf16.msra.mxu0 %v5314_v15  ;;  %v5388_v15 = vld [vmem:[#allocation9 + $0x60] sm:$0xff]  }
  0xf6   : > { %6387 = vst [vmem:[#allocation37_spill] sm:$0xff] %v5363_v1  ;;  %v5368_v7 = vld [vmem:[#allocation2 + $0x30] sm:$0xf]  ;;  %v5370_v8 = vld [vmem:[#allocation2 + $0x34] sm:$0xf]  ;;  %v5372_v10 = vor.u32 %v1592_v56, %v1591_v63  ;;  %v1602_v11 = vshrl.u32 %v5357_v59, 16  ;;  %4161 = vmatprep.subr.bf16.mxu0 %v4535_v60  ;;  %v3862_v24 = vcombine.low %v5357_v59, %v5363_v1 }
  0xf7   : > { %v590_v29 = vld [vmem:[#allocation2 + $0x8] sm:$0xf]  ;;  %v591_v31 = vld [vmem:[#allocation2 + $0xc] sm:$0xf]  ;;  %6386 = vst [vmem:[#allocation36_spill] sm:$0xff] %v5360_v61  ;;  %v1611_v14 = vshrl.u32 %v5363_v1, 16  ;;  %v5381_v17 = vor.u32 %v646_v0, %v5366_v3  ;;  %v3782_v36 = vcombine.low %v5368_v7, %v5370_v8 }
  0xf8   : > { %v621_v32 = vshrl.u32 %v590_v29, 16  ;;  %v624_v33 = vshll.u32 %v590_v29, 16  ;;  %v630_v37 = vshrl.u32 %v591_v31, 16  ;;  %v633_v38 = vshll.u32 %v591_v31, 16  ;;  %6388 = vst [vmem:[#allocation38_spill] sm:$0xff] %v5372_v10  ;;  %4147 = vmatprep.mubr.msk.bf16.mxu0 %vm852_vm5, %v3862_v24  ;;  %s3771_s18 = sshll.u32 %s5266_s1, 7 }
  0xf9   : > { %v3780_v41 = vcombine.low %v590_v29, %v591_v31  ;;  %v5378_v16 = vld [vmem:[#allocation2 + $0x58] sm:$0xf]  ;;  %v650_v18 = vrot.slane %v5366_v3, 4  ;;  %v654_v19 = vrot.slane %v652_v4, 7  ;;  %v5386_v21 = vld [vmem:[#allocation2 + $0x5c] sm:$0xf]  ;;  %4162 = vmatpush3.bf16.msra.mxu0 %v4535_v60 }
  0xfa   : > { %v5340_v40 = vrot.slane %v621_v32, 7  ;;  %v632_v48 = vrot.slane %v630_v37, 7  ;;  %6389 = vst [vmem:[#allocation39_spill] sm:$0xff] %v5378_v16  ;;  %6390 = vst [vmem:[#allocation40_spill] sm:$0xff] %v5386_v21  ;;  %v5391_v22 = vrot.slane %v1602_v11, 7  ;;  %v5393_v23 = vrot.slane %v1611_v14, 7  ;;  %4179 = vmatprep.subr.bf16.mxu0 %v5388_v15 }
  0xfb   : > { %4063 = vmatprep.mubr.msk.bf16.mxu1 %vm852_vm5, %v3780_v41  ;;  %v665_v25 = vshrl.u32 %v5368_v7, 16  ;;  %v5398_v26 = vld [vmem:[#allocation2 + $0x44] sm:$0xf]  ;;  %v5400_v27 = vld [vmem:[#allocation2 + $0x48] sm:$0xf]  ;;  %v5402_v28 = vor.u32 %v655_v5, %v654_v19  ;;  %v1624_v37 = vshrl.u32 %v5378_v16, 16  ;;  %v3863_v44 = vcombine.low %v5378_v16, %v5386_v21 }
  0xfc   : > { %v5349_v50 = vor.u32 %v624_v33, %v5340_v40  ;;  %v628_v51 = vrot.slane %v5340_v40, 4  ;;  %v5355_v55 = vor.u32 %v633_v38, %v632_v48  ;;  %4064 = vmatmul.mubr.msk.bf16.vlgmr.msra.gmra.mrb[0].mxu1 %vm852_vm5, %v3781_v6  ;;  %6391 = vst [vmem:[#allocation41_spill] sm:$0xff] %v5391_v22  ;;  %6392 = vst [vmem:[#allocation42_spill] sm:$0xff] %v5393_v23  ;;  %vm1156_vm7 = vsmask.f32 7440  ;;  %v5407_v32 = vld [vmem:[#allocation9 + $0x20] sm:$0xff]  }
  0xfd   : > { %4080 = vmatpush3.bf16.msra.mxu1 %v5308_v12  ;;  %v674_v12 = vshrl.u32 %v5370_v8, 16  ;;  %v2100_v31 = vld [vmem:[#allocation2 + $0x1c] sm:$0xf]  ;;  %v5410_v33 = vrot.slane %v665_v25, 7  ;;  %v2101_v39 = vld [vmem:[#allocation2 + $0x20] sm:$0xf]  ;;  %4067 = vmatprep.mubr.msk.bf16.mxu1 %vm852_vm5, %v3782_v36  ;;  %v3783_v63 = vcombine.low %v5398_v26, %v5400_v27  ;;  %vm5463_vm9 = vmor %vm1155_vm6, %vm1156_vm7 }
  0xfe   : > { %4081 = vmatprep.subr.bf16.mxu1 %v4538_v9  ;;  %v1633_v42 = vshrl.u32 %v5386_v21, 16  ;;  %v2102_v48 = vld [vmem:[#allocation2 + $0x24] sm:$0x1]  ;;  %v5424_v49 = vrot.slane %v1624_v37, 7  ;;  %v687_v53 = vshrl.u32 %v5398_v26, 16  ;;  %v696_v56 = vshrl.u32 %v5400_v27, 16  ;;  %4148 = vmatmul.mubr.msk.bf16.gmra.mrb[4].mxu0 %vm852_vm5, %v3863_v44 }
  0xff   : > { %v5416_v41 = vrot.slane %v674_v12, 7  ;;  %v5429_v57 = vld [vmem:[#allocation2 + $0x58] sm:$0xf]  ;;  %v2125_v0 = vshrl.u32 %v2100_v31, 16  ;;  %v5437_v4 = vld [vmem:[#allocation2 + $0x5c] sm:$0xf] }
 0x100   : > { %6393 = vst [vmem:[#allocation43_spill] sm:$0xff] %v5424_v49  ;;  %v5431_v58 = vrot.slane %v1633_v42, 7  ;;  %v565_v5 = vld [vmem:[#allocation2 + $0x38] sm:$0x1]  ;;  %v5440_v6 = vrot.slane %v687_v53, 7  ;;  %v5442_v11 = vrot.slane %v696_v56, 7 }
 0x101   : > { %4082 = vmatpush3.bf16.msra.mxu1 %v4538_v9  ;;  %vm613_vm8 = vsmask.f32 4368  ;;  %v2128_v9 = vshll.u32 %v2100_v31, 16  ;;  %v2134_v14 = vshll.u32 %v2101_v39, 16  ;;  %v2103_v19 = vld [vmem:[#allocation2 + $0x30] sm:$0xf] }
 0x102   : > { %6394 = vst [vmem:[#allocation44_spill] sm:$0xff] %v5431_v58  ;;  %4099 = vmatprep.subr.bf16.mxu1 %v5407_v32  ;;  %v2104_v24 = vld [vmem:[#allocation2 + $0x34] sm:$0xf]  ;;  %v2127_v25 = vrot.slane %v2125_v0, 4  ;;  %v2138_v12 = vshrl.u32 %v2101_v39, 16  ;;  %v2144_v36 = vshll.u32 %v2102_v48, 16  ;;  %vm5488_vm10 = vmor %vm557_vm1, %vm613_vm8 }
 0x103   : > { %v709_v37 = vshrl.u32 %v5429_v57, 16  ;;  %v2130_v42 = vrot.slane %v2128_v9, 5  ;;  %v2136_v44 = vrot.slane %v2134_v14, 5  ;;  %v718_v56 = vshrl.u32 %v5437_v4, 16  ;;  %v476_v43 = vld [vmem:[%s5269_s21 + $0x20] sm:$0xf] }
 0x104   : > { %4068 = vmatmul.mubr.msk.bf16.gmra.mrb[4].mxu1 %vm852_vm5, %v3783_v63  ;;  %v2140_v38 = vrot.slane %v2138_v12, 4  ;;  %v2146_v31 = vrot.slane %v2144_v36, 5  ;;  %v477_v62 = vld [vmem:[%s5269_s21 + $0x24] sm:$0xf]  ;;  %494 = vst.msk [vmem:[#allocation2 + $0x6c] sm:$0xf] %vm485_vm3, %v476_v43  ;;  %v3784_v63 = vcombine.low %v5429_v57, %v5437_v4 }
 0x105   : > { %v5449_v20 = vrot.slane %v709_v37, 7  ;;  %v2131_v39 = vor.u32 %v2130_v42, %v2127_v25  ;;  %v5454_v48 = vrot.slane %v718_v56, 7  ;;  %v566_v0 = vsel %vm5289_vm2, 0, %v565_v5  ;;  %495 = vst.msk [vmem:[#allocation2 + $0x70] sm:$0xf] %vm485_vm3, %v477_v62  ;;  %s6126_s17 = scalar_lea.vmem [#allocation11], %s3771_s18 }
 0x106   : > { %v568_v9 = vld [vmem:[#allocation2 + $0x4c] sm:$0x1]  ;;  %v2106_v14 = vld [vmem:[#allocation2 + $0x44] sm:$0xf]  ;;  %v2141_v43 = vor.u32 %v2140_v38, %v2136_v44  ;;  %567 = vst [vmem:[#allocation2 + $0x38] sm:$0x1] %v566_v0  ;;  %4071 = vmatprep.mubr.msk.bf16.mxu1 %vm852_vm5, %v3784_v63 }
 0x107   : > { %v2149_v25 = vshrl.u32 %v2103_v19, 16  ;;  %v2152_v36 = vshll.u32 %v2103_v19, 16  ;;  %v2158_v37 = vshll.u32 %v2104_v24, 16  ;;  %v2107_v42 = vld [vmem:[#allocation2 + $0x48] sm:$0xf]  ;;  %v2132_v56 = vrot.slane %v2131_v39, 4 }
 0x108   : > { %v2162_v5 = vshrl.u32 %v2104_v24, 16  ;;  %v569_v62 = vsel %vm5289_vm2, 0, %v568_v9  ;;  %v2173_v46 = vshrl.u32 %v2106_v14, 16  ;;  %v478_v34 = vld [vmem:[%s5269_s21 + $0x28] sm:$0xf]  ;;  %v2142_v13 = vrot.slane %v2141_v43, 4 }
 0x109   : > { %v2151_v53 = vrot.slane %v2149_v25, 4  ;;  %v2154_v60 = vrot.slane %v2152_v36, 5  ;;  %v5471_v54 = vrot.slane %v2158_v37, 5  ;;  %570 = vst [vmem:[#allocation2 + $0x4c] sm:$0x1] %v569_v62  ;;  %v2137_v19 = vsel %vm5463_vm9, %v2132_v56, %v2136_v44  ;;  %s6440_s8 = sld [smem:[#allocation21_spill]] }
 0x10a   : > { %v479_v38 = vld [vmem:[%s5269_s21 + $0x2c] sm:$0xf]  ;;  %496 = vst.msk [vmem:[#allocation2 + $0x80] sm:$0xf] %vm485_vm3, %v478_v34  ;;  %v2164_v39 = vrot.slane %v2162_v5, 4  ;;  %v2175_v24 = vrot.slane %v2173_v46, 4  ;;  %v2147_v9 = vsel %vm5463_vm9, %v2142_v13, %v2146_v31 }
 0x10b   : > { %v2176_v63 = vshll.u32 %v2106_v14, 16  ;;  %497 = vst.msk [vmem:[#allocation2 + $0x84] sm:$0xf] %vm485_vm3, %v479_v38  ;;  %v571_v0 = vld [vmem:[#allocation2 + $0x60] sm:$0x1]  ;;  %v2155_v43 = vor.u32 %v2154_v60, %v2151_v53  ;;  %v2182_v25 = vshll.u32 %v2107_v42, 16  ;;  %v3878_v37 = vcombine.low %v2137_v19, %v2147_v9 }
 0x10c   : > { %v2186_v36 = vshrl.u32 %v2107_v42, 16  ;;  %v2165_v62 = vor.u32 %v2164_v39, %v5471_v54  ;;  %v5481_v34 = vld [vmem:[#allocation2 + $0x6c] sm:$0xf]  ;;  %v572_v44 = vsel %vm5289_vm2, 0, %v571_v0  ;;  %v480_v46 = vld [vmem:[%s5269_s21 + $0x30] sm:$0xf] }
 0x10d   : > { %v2178_v30 = vrot.slane %v2176_v63, 5  ;;  %v2156_v13 = vrot.slane %v2155_v43, 4  ;;  %v5492_v60 = vld [vmem:[#allocation2 + $0x70] sm:$0xf]  ;;  %v731_v53 = vshrl.u32 %v5481_v34, 16  ;;  %v2184_v42 = vrot.slane %v2182_v25, 5  ;;  %4163 = vmatprep.mubr.msk.bf16.mxu0 %vm852_vm5, %v3878_v37 }
 0x10e   : > { %573 = vst [vmem:[#allocation2 + $0x60] sm:$0x1] %v572_v44  ;;  %498 = vst.msk [vmem:[#allocation2 + $0x94] sm:$0xf] %vm485_vm3, %v480_v46  ;;  %vm524_vm12 = vsmask.f32 7950  ;;  %v3785_v39 = vcombine.low %v5481_v34, %v5492_v60 }
 0x10f   : > { %v2105_v56 = vld [vmem:[#allocation2 + $0x38] sm:$0x1]  ;;  %v2166_v5 = vrot.slane %v2165_v62, 4  ;;  %v740_v38 = vshrl.u32 %v5492_v60, 16  ;;  %v2161_v63 = vsel %vm5463_vm9, %v2156_v13, %v5471_v54  ;;  %v5505_v9 = vrot.slane %v731_v53, 7  ;;  %vm5562_vm13 = vmand %vm523_vm11, %vm524_vm12  ;;  %s3968_s27 = sshll.u32 %s6376_s11, 4 }
 0x110   : > { %v2168_v0 = vshll.u32 %v2105_v56, 16  ;;  %v2179_v43 = vor.u32 %v2178_v30, %v2175_v24  ;;  %v481_v25 = vld [vmem:[%s5269_s21 + $0x34] sm:$0xf]  ;;  %4072 = vmatmul.mubr.msk.bf16.gmra.mrb[8].mxu1 %vm852_vm5, %v3785_v39  ;;  %v2188_v62 = vrot.slane %v2186_v36, 4  ;;  %v2109_v19 = vld [vmem:[#allocation2 + $0x58] sm:$0xf]  ;;  %v5519_v54 = vsel %vm5488_vm10, %v628_v51, %v5355_v55 }
 0x111   : > { %v5508_v44 = vrot.slane %v740_v38, 7  ;;  %v2108_v37 = vld [vmem:[#allocation2 + $0x4c] sm:$0x1]  ;;  %v5511_v46 = vld [vmem:[#allocation2 + $0x80] sm:$0xf]  ;;  %v5526_v30 = vsel %vm5488_vm10, %v650_v18, %v5402_v28  ;;  %v2197_v21 = vshrl.u32 %v2109_v19, 16 }
 0x112   : > { %499 = vst.msk [vmem:[#allocation2 + $0x98] sm:$0xf] %vm485_vm3, %v481_v25  ;;  %v2170_v24 = vrot.slane %v2168_v0, 5  ;;  %v2180_v36 = vrot.slane %v2179_v43, 4  ;;  %v2192_v13 = vshll.u32 %v2108_v37, 16  ;;  %v753_v56 = vshrl.u32 %v5511_v46, 16 }
 0x113   : > { %v5528_v53 = vld [vmem:[#allocation2 + $0x84] sm:$0xf]  ;;  %v2189_v38 = vor.u32 %v2188_v62, %v2184_v42  ;;  %v2110_v39 = vld [vmem:[#allocation2 + $0x5c] sm:$0xf]  ;;  %v4544_v43 = vld [vmem:[#allocation9 + $0x68] sm:$0xff]   ;;  %vm3523_vm15 = vcmask 523264  }
 0x114   : > { %v762_v51 = vshrl.u32 %v5528_v53, 16  ;;  %v2171_v3 = vsel %vm5463_vm9, %v2166_v5, %v2170_v24  ;;  %v2185_v18 = vsel %vm5463_vm9, %v2180_v36, %v2184_v42  ;;  %v2194_v28 = vrot.slane %v2192_v13, 5  ;;  %v574_v29 = vld [vmem:[#allocation2 + $0x74] sm:$0x1]  ;;  %v2112_v42 = vld [vmem:[#allocation2 + $0x6c] sm:$0xf] }
 0x115   : > { %v5538_v0 = vrot.slane %v753_v56, 7  ;;  %v3879_v25 = vcombine.low %v2161_v63, %v2171_v3  ;;  %v2190_v37 = vrot.slane %v2189_v38, 4  ;;  %v3786_v40 = vcombine.low %v5511_v46, %v5528_v53  ;;  %v2111_v31 = vld [vmem:[#allocation2 + $0x60] sm:$0x1]  ;;  %v5544_v55 = vld [vmem:[#allocation2 + $0x94] sm:$0xf] }
 0x116   : > { %v5540_v62 = vrot.slane %v762_v51, 7  ;;  %v2200_v5 = vshll.u32 %v2109_v19, 16  ;;  %v2206_v24 = vshll.u32 %v2110_v39, 16  ;;  %v2210_v58 = vshrl.u32 %v2110_v39, 16  ;;  %v2113_v38 = vld [vmem:[#allocation2 + $0x70] sm:$0xf] }
 0x117   : > { %4164 = vmatmul.mubr.msk.bf16.vlgmr.msra.gmra.mrb[0].mxu0 %vm852_vm5, %v3879_v25  ;;  %v2195_v63 = vsel %vm5463_vm9, %v2190_v37, %v2194_v28  ;;  %4075 = vmatprep.mubr.msk.bf16.mxu1 %vm852_vm5, %v3786_v40  ;;  %v2216_v36 = vshll.u32 %v2111_v31, 16  ;;  %v775_v13 = vshrl.u32 %v5544_v55, 16  ;;  %v526_v51 = vld [vmem:[#allocation2 + $0x4] sm:$0x8]  ;;  %v2199_v3 = vrot.slane %v2197_v21, 4  ;;  %v5555_v25 = vld [vmem:[#allocation9 + $0x70] sm:$0xff]  }
 0x118   : > { %4180 = vmatpush3.bf16.msra.mxu0 %v5388_v15  ;;  %v3880_v19 = vcombine.low %v2185_v18, %v2195_v63  ;;  %v2202_v39 = vrot.slane %v2200_v5, 5  ;;  %v2208_v16 = vrot.slane %v2206_v24, 5  ;;  %v2212_v28 = vrot.slane %v2210_v58, 4  ;;  %v577_v15 = vld [vmem:[#allocation2 + $0x88] sm:$0x1]  ;;  %s3963_s28 = sshll.u32 %s6440_s8, 5 }
 0x119   : > { %v5553_v49 = vld [vmem:[#allocation2 + $0x98] sm:$0xf]  ;;  %v2218_v37 = vrot.slane %v2216_v36, 5  ;;  %v5557_v40 = vrot.slane %v775_v13, 7  ;;  %4181 = vmatprep.subr.bf16.mxu0 %v4544_v43  ;;  %v575_v5 = vsel %vm5289_vm2, 0, %v574_v29  ;;  %v2221_v1 = vshrl.u32 %v2112_v42, 16  ;;  %s3555_s7 = sadd.s32 %s3968_s27, %s3963_s28 }
 0x11a   : > { %6399 = vst [vmem:[#allocation45_spill] sm:$0xff] %v5553_v49  ;;  %v784_v31 = vshrl.u32 %v5553_v49, 16  ;;  %4167 = vmatprep.mubr.msk.bf16.mxu0 %vm852_vm5, %v3880_v19  ;;  %v2203_v21 = vor.u32 %v2202_v39, %v2199_v3  ;;  %v3787_v58 = vcombine.low %v5544_v55, %v5553_v49  ;;  %v2115_v24 = vld [vmem:[#allocation2 + $0x80] sm:$0xf]  ;;  %v2116_v63 = vld [vmem:[#allocation2 + $0x84] sm:$0xf]  ;;  %v2213_v36 = vor.u32 %v2212_v28, %v2208_v16 }
 0x11b   : > { %576 = vst [vmem:[#allocation2 + $0x74] sm:$0x1] %v575_v5  ;;  %v2224_v23 = vshll.u32 %v2112_v42, 16  ;;  %v2230_v19 = vshll.u32 %v2113_v38, 16  ;;  %v2234_v3 = vshrl.u32 %v2113_v38, 16  ;;  %v527_v39 = vsel %vm5562_vm13, 0, %v526_v51 }
 0x11c   : > { %v5572_v13 = vrot.slane %v784_v31, 7  ;;  %v2204_v61 = vrot.slane %v2203_v21, 4  ;;  %4076 = vmatmul.mubr.msk.bf16.gmra.mrb[12].mxu1 %vm852_vm5, %v3787_v58  ;;  %4182 = vmatpush3.bf16.msra.mxu0 %v4544_v43  ;;  %v2214_v18 = vrot.slane %v2213_v36, 4  ;;  %v2223_v59 = vrot.slane %v2221_v1, 4  ;;  %528 = vst [vmem:[#allocation2 + $0x4] sm:$0x8] %v527_v39 }
 0x11d   : > { %v2226_v29 = vrot.slane %v2224_v23, 5  ;;  %v578_v28 = vsel %vm5289_vm2, 0, %v577_v15  ;;  %4199 = vmatprep.subr.bf16.mxu0 %v5555_v25  ;;  %v2232_v31 = vrot.slane %v2230_v19, 5  ;;  %v2236_v21 = vrot.slane %v2234_v3, 4  ;;  %v529_v58 = vld [vmem:[#allocation2 + $0x18] sm:$0x8] }
 0x11e   : > { %v2209_v42 = vsel %vm5463_vm9, %v2204_v61, %v2208_v16  ;;  %579 = vst [vmem:[#allocation2 + $0x88] sm:$0x1] %v578_v28  ;;  %v2245_v38 = vshrl.u32 %v2115_v24, 16  ;;  %v2219_v43 = vsel %vm5463_vm9, %v2214_v18, %v2218_v37  ;;  %v2248_v23 = vshll.u32 %v2115_v24, 16  ;;  %v580_v5 = vld [vmem:[#allocation2 + $0x9c] sm:$0x1] }
 0x11f   : > { %v2227_v1 = vor.u32 %v2226_v29, %v2223_v59  ;;  %v2254_v51 = vshll.u32 %v2116_v63, 16  ;;  %v2118_v15 = vld [vmem:[#allocation2 + $0x94] sm:$0xf]  ;;  %v3881_v36 = vcombine.low %v2209_v42, %v2219_v43  ;;  %v2237_v39 = vor.u32 %v2236_v21, %v2232_v31  ;;  %v2119_v61 = vld [vmem:[#allocation2 + $0x98] sm:$0xf]  ;;  %s3964_s2 = sshll.u32 %s3555_s7, 7 }
 0x120   : > { %v2247_v22 = vrot.slane %v2245_v38, 4  ;;  %v2258_v45 = vshrl.u32 %v2116_v63, 16  ;;  %v482_v16 = vld [vmem:[%s5269_s21 + $0x38] sm:$0xf]  ;;  %v2250_v3 = vrot.slane %v2248_v23, 5  ;;  %v530_v52 = vsel %vm5562_vm13, 0, %v529_v58 }
 0x121   : > { %v2228_v19 = vrot.slane %v2227_v1, 4  ;;  %v2256_v28 = vrot.slane %v2254_v51, 5  ;;  %v483_v10 = vld [vmem:[%s5269_s21 + $0x3c] sm:$0xf]  ;;  %500 = vst.msk [vmem:[#allocation2 + $0xa8] sm:$0xf] %vm485_vm3, %v482_v16  ;;  %4168 = vmatmul.mubr.msk.bf16.gmra.mrb[4].mxu0 %vm852_vm5, %v3881_v36 }
 0x122   : > { %v2114_v59 = vld [vmem:[#allocation2 + $0x74] sm:$0x1]  ;;  %v2238_v37 = vrot.slane %v2237_v39, 4  ;;  %v2260_v18 = vrot.slane %v2258_v45, 4  ;;  %531 = vst [vmem:[#allocation2 + $0x18] sm:$0x8] %v530_v52  ;;  %v2251_v21 = vor.u32 %v2250_v3, %v2247_v22 }
 0x123   : > { %v581_v24 = vsel %vm5289_vm2, 0, %v580_v5  ;;  %v2269_v63 = vshrl.u32 %v2118_v15, 16  ;;  %501 = vst.msk [vmem:[#allocation2 + $0xac] sm:$0xf] %vm485_vm3, %v483_v10  ;;  %v2233_v29 = vsel %vm5463_vm9, %v2228_v19, %v2232_v31  ;;  %v2240_v42 = vshll.u32 %v2114_v59, 16  ;;  %s3558_s30 = sshll.u32 %s6126_s17, 4  ;;  %s6186_s30 = int_to_ptr.vmem [resolvable:$true] %s3558_s30 }
 0x124   : > { %582 = vst [vmem:[#allocation2 + $0x9c] sm:$0x1] %v581_v24  ;;  %v2272_v38 = vshll.u32 %v2118_v15, 16  ;;  %v532_v58 = vld [vmem:[#allocation2 + $0x2c] sm:$0x8]  ;;  %v2261_v1 = vor.u32 %v2260_v18, %v2256_v28  ;;  %v2278_v51 = vshll.u32 %v2119_v61, 16 }
 0x125   : > { %v589_v43 = vld [vmem:[#allocation2 + $0x4] sm:$0x8]  ;;  %v2271_v23 = vrot.slane %v2269_v63, 4  ;;  %v2282_v45 = vshrl.u32 %v2119_v61, 16  ;;  %v2242_v52 = vrot.slane %v2240_v42, 5  ;;  %v2252_v5 = vrot.slane %v2251_v21, 4 }
 0x126   : > { %v616_v36 = vshrl.u32 %v589_v43, 16  ;;  %v2117_v39 = vld [vmem:[#allocation2 + $0x88] sm:$0x1]  ;;  %v2274_v16 = vrot.slane %v2272_v38, 5  ;;  %v2262_v35 = vrot.slane %v2261_v1, 4  ;;  %v2280_v47 = vrot.slane %v2278_v51, 5 }
 0x127   : > { %v2264_v10 = vshll.u32 %v2117_v39, 16  ;;  %v2284_v49 = vrot.slane %v2282_v45, 4  ;;  %v2243_v22 = vsel %vm5463_vm9, %v2238_v37, %v2242_v52  ;;  %v2257_v15 = vsel %vm5463_vm9, %v2252_v5, %v2256_v28  ;;  %v583_v3 = vld [vmem:[#allocation2 + $0xb0] sm:$0x1]  ;;  %s6441_s21 = sld [smem:[#allocation27_spill]]  ;;  %s3541_s14 = scalar_lea.sflag [#allocation5], %s5266_s1 }
 0x128   : > { %v3772_v31 = vrot.slane %v616_v36, 11  ;;  %v2275_v19 = vor.u32 %v2274_v16, %v2271_v23  ;;  %v3882_v59 = vcombine.low %v2233_v29, %v2243_v22  ;;  %v533_v24 = vsel %vm5562_vm13, 0, %v532_v58  ;;  %v2121_v63 = vld [vmem:[#allocation2 + $0xa8] sm:$0xf]  ;;  %v535_v36 = vld [vmem:[#allocation2 + $0x40] sm:$0x8] }
 0x129   : > { %v2266_v61 = vrot.slane %v2264_v10, 5  ;;  %v2285_v18 = vor.u32 %v2284_v49, %v2280_v47  ;;  %v592_v21 = vld [vmem:[#allocation2 + $0x18] sm:$0x8]  ;;  %534 = vst [vmem:[#allocation2 + $0x2c] sm:$0x8] %v533_v24  ;;  %v6402_v37 = vshll.u32 %v5368_v7, 16 }
 0x12a   : > { %v627_v42 = vsel %vm5488_vm10, %v3772_v31, %v5349_v50  ;;  %v2276_v38 = vrot.slane %v2275_v19, 4  ;;  %v672_v29 = vrot.slane %v5410_v33, 4  ;;  %v2122_v43 = vld [vmem:[#allocation2 + $0xac] sm:$0xf]  ;;  %4171 = vmatprep.mubr.msk.bf16.mxu0 %vm852_vm5, %v3882_v59  ;;  %v638_v1 = vshrl.u32 %v592_v21, 16  ;;  %v4545_v19 = vld [vmem:[#allocation9 + $0x28] sm:$0xff]  }
 0x12b   : > { %v5607_v28 = vor.u32 %v6402_v37, %v5410_v33  ;;  %v3798_v49 = vcombine.low %v627_v42, %v5519_v54  ;;  %v2267_v58 = vsel %vm5463_vm9, %v2262_v35, %v2266_v61  ;;  %v2120_v50 = vld [vmem:[#allocation2 + $0x9c] sm:$0x1]  ;;  %v2286_v23 = vrot.slane %v2285_v18, 4  ;;  %v5635_v24 = vld [vmem:[#allocation2 + $0x30] sm:$0xf]  ;;  %s4843_s16 = smov [#allocation11]  }
 0x12c   : > { %v3883_v51 = vcombine.low %v2257_v15, %v2267_v58  ;;  %v2281_v45 = vsel %vm5463_vm9, %v2276_v38, %v2280_v47  ;;  %v2288_v7 = vshll.u32 %v2120_v50, 16  ;;  %v6403_v52 = vshll.u32 %v5370_v8, 16  ;;  %s4681_s4 = sshll.u32 %s4843_s16, 4  ;;  %s4682_s4 = int_to_ptr.vmem [resolvable:$false] %s4681_s4 }
 0x12d   : > { %4083 = vmatprep.mubr.msk.bf16.mxu1 %vm852_vm5, %v3798_v49  ;;  %v3773_v39 = vrot.slane %v638_v1, 11  ;;  %v584_v54 = vsel %vm5289_vm2, 0, %v583_v3  ;;  %v2293_v35 = vshrl.u32 %v2121_v63, 16  ;;  %v2296_v5 = vshll.u32 %v2121_v63, 16  ;;  %v5637_v63 = vld [vmem:[#allocation2 + $0x34] sm:$0xf]  ;;  %p4684_p12 = scmp.lt.s32.totalorder %s6186_s30, %s4682_s4 }
 0x12e   : > { %v679_v33 = vor.u32 %v6403_v52, %v5416_v41  ;;  %4172 = vmatmul.mubr.msk.bf16.gmra.mrb[8].mxu0 %vm852_vm5, %v3883_v51  ;;  %v2290_v16 = vrot.slane %v2288_v7, 5  ;;  %585 = vst [vmem:[#allocation2 + $0xb0] sm:$0x1] %v584_v54  ;;  %v2302_v10 = vshll.u32 %v2122_v43, 16  ;;  %v2306_v22 = vshrl.u32 %v2122_v43, 16  ;;  %p6443_p6 = scmp.ne.s32.totalorder %s6441_s21, 0 }
 0x12f   : > { %v649_v8 = vsel %vm5488_vm10, %v3773_v39, %v5381_v17  ;;  %v2295_v41 = vrot.slane %v2293_v35, 4  ;;  %v2298_v31 = vrot.slane %v2296_v5, 5  ;;  %v536_v15 = vsel %vm5562_vm13, 0, %v535_v36 }
 0x130   : > { %v680_v47 = vsel %vm5488_vm10, %v672_v29, %v679_v33  ;;  %v3799_v3 = vcombine.low %v649_v8, %v5526_v30  ;;  %v2291_v59 = vsel %vm5463_vm9, %v2286_v23, %v2290_v16  ;;  %v5633_v61 = vrot.slane %v2302_v10, 5  ;;  %537 = vst [vmem:[#allocation2 + $0x40] sm:$0x8] %v536_v15  ;;  %v595_v42 = vld [vmem:[#allocation2 + $0x2c] sm:$0x8] }
 0x131   : > { %v2308_v18 = vrot.slane %v2306_v22, 4  ;;  %v3884_v17 = vcombine.low %v2281_v45, %v2291_v59  ;;  %v2299_v21 = vor.u32 %v2298_v31, %v2295_v41  ;;  %v6404_v38 = vshll.u32 %v5398_v26, 16  ;;  %v2495_v29 = vld [vmem:[#allocation2 + $0x2c] sm:$0x8]  ;;  %v538_v45 = vld [vmem:[#allocation2 + $0x54] sm:$0x8] }
 0x132   : > { %v694_v30 = vrot.slane %v5440_v6, 4  ;;  %4084 = vmatmul.mubr.msk.bf16.vlgmr.msra.gmra.mrb[0].mxu1 %vm852_vm5, %v3799_v3  ;;  %v660_v43 = vshrl.u32 %v595_v42, 16  ;;  %v6405_v58 = vshll.u32 %v5400_v27, 16  ;;  %v2520_v50 = vshrl.u32 %v2495_v29, 16  ;;  %v5673_v41 = vld [vmem:[#allocation2 + $0x44] sm:$0xf] }
 0x133   : > { %v5642_v37 = vor.u32 %v6404_v38, %v5440_v6  ;;  %v2309_v49 = vor.u32 %v2308_v18, %v5633_v61  ;;  %4100 = vmatpush3.bf16.msra.mxu1 %v5407_v32  ;;  %4175 = vmatprep.mubr.msk.bf16.mxu0 %vm852_vm5, %v3884_v17  ;;  %v2300_v26 = vrot.slane %v2299_v21, 4  ;;  %v2525_v23 = vshrl.u32 %v5635_v24, 16 }
 0x134   : > { %v701_v1 = vor.u32 %v6405_v58, %v5442_v11  ;;  %v2528_v6 = vshll.u32 %v5635_v24, 16  ;;  %v2534_v51 = vshrl.u32 %v5637_v63, 16  ;;  %v3774_v7 = vrot.slane %v660_v43, 11  ;;  %4101 = vmatprep.subr.bf16.mxu1 %v4545_v19  ;;  %v5657_v11 = vld [vmem:[#allocation9 + $0x30] sm:$0xff]  }
 0x135   : > { %v2310_v52 = vrot.slane %v2309_v49, 4  ;;  %v3896_v27 = vrot.slane %v2520_v50, 11  ;;  %v2123_v32 = vld [vmem:[#allocation2 + $0xb0] sm:$0x1]  ;;  %v2305_v36 = vsel %vm5463_vm9, %v2300_v26, %v5633_v61  ;;  %v2527_v39 = vrot.slane %v2525_v23, 7 }
 0x136   : > { %v702_v33 = vsel %vm5488_vm10, %v694_v30, %v701_v1  ;;  %v2536_v54 = vrot.slane %v2534_v51, 7  ;;  %v2537_v35 = vshll.u32 %v5637_v63, 16  ;;  %v671_v5 = vsel %vm5488_vm10, %v3774_v7, %v5607_v28  ;;  %v5685_v30 = vld [vmem:[#allocation2 + $0x48] sm:$0xf]  ;;  %v5693_v23 = vld [vmem:[#allocation2 + $0x58] sm:$0xf] }
 0x137   : > { %v2312_v16 = vshll.u32 %v2123_v32, 16  ;;  %v539_v10 = vsel %vm5562_vm13, 0, %v538_v45  ;;  %v6406_v22 = vshll.u32 %v5429_v57, 16  ;;  %v3800_v31 = vcombine.low %v671_v5, %v680_v47  ;;  %v598_v15 = vld [vmem:[#allocation2 + $0x40] sm:$0x8]  ;;  %4102 = vmatpush3.bf16.msra.mxu1 %v4545_v19 }
 0x138   : > { %v2530_v3 = vor.u32 %v2528_v6, %v2527_v39  ;;  %v2532_v59 = vrot.slane %v2527_v39, 4  ;;  %v2539_v61 = vor.u32 %v2537_v35, %v2536_v54  ;;  %540 = vst [vmem:[#allocation2 + $0x54] sm:$0x8] %v539_v10  ;;  %v2498_v18 = vld [vmem:[#allocation2 + $0x40] sm:$0x8]  ;;  %v682_v17 = vshrl.u32 %v598_v15, 16  ;;  %4119 = vmatprep.subr.bf16.mxu1 %v5657_v11 }
 0x139   : > { %v5671_v8 = vor.u32 %v6406_v22, %v5449_v20  ;;  %v2314_v28 = vrot.slane %v2312_v16, 5  ;;  %v716_v42 = vrot.slane %v5449_v20, 4  ;;  %v6407_v21 = vshll.u32 %v5437_v4, 16  ;;  %4087 = vmatprep.mubr.msk.bf16.mxu1 %vm852_vm5, %v3800_v31  ;;  %v541_v20 = vld [vmem:[#allocation2 + $0x68] sm:$0x8] }
 0x13a   : > { %v2531_v47 = vsel %vm5488_vm10, %v3896_v27, %v2530_v3  ;;  %v2540_v38 = vsel %vm5488_vm10, %v2532_v59, %v2539_v61  ;;  %v2542_v19 = vshrl.u32 %v2498_v18, 16  ;;  %v2547_v29 = vshrl.u32 %v5673_v41, 16 }
 0x13b   : > { %v723_v57 = vor.u32 %v6407_v21, %v5454_v48  ;;  %v2315_v4 = vsel %vm5463_vm9, %v2310_v52, %v2314_v28  ;;  %v3775_v48 = vrot.slane %v682_v17, 11  ;;  %v3904_v43 = vcombine.low %v2531_v47, %v2540_v38  ;;  %v5702_v52 = vld [vmem:[#allocation2 + $0x5c] sm:$0xf]  ;;  %v5729_v21 = vld [vmem:[#allocation2 + $0x6c] sm:$0xf] }
 0x13c   : > { %v3885_v58 = vcombine.low %v2305_v36, %v2315_v4  ;;  %v3897_v1 = vrot.slane %v2542_v19, 11  ;;  %v2549_v50 = vrot.slane %v2547_v29, 7  ;;  %v2550_v26 = vshll.u32 %v5673_v41, 16 }
 0x13d   : > { %v724_v49 = vsel %vm5488_vm10, %v716_v42, %v723_v57  ;;  %v693_v6 = vsel %vm5488_vm10, %v3775_v48, %v5642_v37  ;;  %v2556_v51 = vshrl.u32 %v5685_v30, 16  ;;  %v2559_v45 = vshll.u32 %v5685_v30, 16 }
 0x13e   : > { %v542_v7 = vsel %vm5562_vm13, 0, %v541_v20  ;;  %4176 = vmatmul.mubr.msk.bf16.gmra.mrb[12].mxu0 %vm852_vm5, %v3885_v58  ;;  %v3801_v27 = vcombine.low %v693_v6, %v702_v33  ;;  %v2552_v32 = vor.u32 %v2550_v26, %v2549_v50  ;;  %v2554_v36 = vrot.slane %v2549_v50, 4  ;;  %v4548_v58 = vld [vmem:[#allocation9 + $0x78] sm:$0xff]  }
 0x13f   : > { %543 = vst [vmem:[#allocation2 + $0x68] sm:$0x8] %v542_v7  ;;  %v6408_v39 = vshll.u32 %v5481_v34, 16  ;;  %4183 = vmatprep.mubr.msk.bf16.mxu0 %vm852_vm5, %v3904_v43  ;;  %v601_v37 = vld [vmem:[#allocation2 + $0x54] sm:$0x8]  ;;  %v2558_v35 = vrot.slane %v2556_v51, 7 }
 0x140   : > { %v738_v5 = vrot.slane %v5505_v9, 4  ;;  %v6409_v16 = vshll.u32 %v5492_v60, 16  ;;  %v2501_v22 = vld [vmem:[#allocation2 + $0x54] sm:$0x8]  ;;  %v6410_v33 = vshll.u32 %v5511_v46, 16  ;;  %4088 = vmatmul.mubr.msk.bf16.gmra.mrb[4].mxu1 %vm852_vm5, %v3801_v27  ;;  %v704_v34 = vshrl.u32 %v601_v37, 16 }
 0x141   : > { %v5708_v54 = vor.u32 %v6408_v39, %v5505_v9  ;;  %v2553_v15 = vsel %vm5488_vm10, %v3897_v1, %v2552_v32  ;;  %v2564_v3 = vshrl.u32 %v2501_v22, 16  ;;  %v2569_v59 = vshrl.u32 %v5693_v23, 16  ;;  %v544_v9 = vld [vmem:[#allocation2 + $0x7c] sm:$0x8]  ;;  %v5739_v43 = vld [vmem:[#allocation2 + $0x70] sm:$0xf] }
 0x142   : > { %v745_v10 = vor.u32 %v6409_v16, %v5508_v44  ;;  %v5718_v31 = vor.u32 %v6410_v33, %v5538_v0  ;;  %v2561_v61 = vor.u32 %v2559_v45, %v2558_v35  ;;  %v2572_v44 = vshll.u32 %v5693_v23, 16  ;;  %v5759_v22 = vld [vmem:[#allocation9 + $0x80] sm:$0xff]  }
 0x143   : > { %v2578_v46 = vshrl.u32 %v5702_v52, 16  ;;  %v3776_v18 = vrot.slane %v704_v34, 11  ;;  %v3898_v28 = vrot.slane %v2564_v3, 11  ;;  %v2571_v17 = vrot.slane %v2569_v59, 7 }
 0x144   : > { %v746_v60 = vsel %vm5488_vm10, %v738_v5, %v745_v10  ;;  %v2581_v42 = vshll.u32 %v5702_v52, 16  ;;  %v2562_v57 = vsel %vm5488_vm10, %v2554_v36, %v2561_v61  ;;  %v545_v38 = vsel %vm5562_vm13, 0, %v544_v9  ;;  %v547_v36 = vld [vmem:[#allocation2 + $0x90] sm:$0x8]  ;;  %v5757_v10 = vld [vmem:[#allocation2 + $0x80] sm:$0xf] }
 0x145   : > { %v2580_v47 = vrot.slane %v2578_v46, 7  ;;  %v760_v19 = vrot.slane %v5538_v0, 4  ;;  %v715_v29 = vsel %vm5488_vm10, %v3776_v18, %v5671_v8  ;;  %v3905_v20 = vcombine.low %v2553_v15, %v2562_v57  ;;  %546 = vst [vmem:[#allocation2 + $0x7c] sm:$0x8] %v545_v38 }
 0x146   : > { %v2574_v4 = vor.u32 %v2572_v44, %v2571_v17  ;;  %v2576_v48 = vrot.slane %v2571_v17, 4  ;;  %v3802_v1 = vcombine.low %v715_v29, %v724_v49  ;;  %v604_v50 = vld [vmem:[#allocation2 + $0x68] sm:$0x8]  ;;  %v6411_v6 = vshll.u32 %v5528_v53, 16  ;;  %v559_v17 = vld [vmem:[#allocation2 + $0x10] sm:$0x1] }
 0x147   : > { %v2583_v26 = vor.u32 %v2581_v42, %v2580_v47  ;;  %v2504_v45 = vld [vmem:[#allocation2 + $0x68] sm:$0x8]  ;;  %v2591_v0 = vshrl.u32 %v5729_v21, 16  ;;  %4184 = vmatmul.mubr.msk.bf16.vlgmr.msra.gmra.mrb[0].mxu0 %vm852_vm5, %v3905_v20  ;;  %v726_v8 = vshrl.u32 %v604_v50, 16  ;;  %v2594_v32 = vshll.u32 %v5729_v21, 16 }
 0x148   : > { %v767_v51 = vor.u32 %v6411_v6, %v5540_v62  ;;  %v2575_v7 = vsel %vm5488_vm10, %v3898_v28, %v2574_v4  ;;  %v2586_v27 = vshrl.u32 %v2504_v45, 16  ;;  %4091 = vmatprep.mubr.msk.bf16.mxu1 %vm852_vm5, %v3802_v1  ;;  %4200 = vmatpush3.bf16.msra.mxu0 %v5555_v25  ;;  %v2600_v39 = vshrl.u32 %v5739_v43, 16  ;;  %v6413_v44 = vld [vmem:[#allocation45_spill] sm:$0xff]  ;;  %v5776_v28 = vld [vmem:[#allocation2 + $0x84] sm:$0xf] }
 0x149   : > { %v2584_v53 = vsel %vm5488_vm10, %v2576_v48, %v2583_v26  ;;  %v2593_v49 = vrot.slane %v2591_v0, 7  ;;  %v3777_v37 = vrot.slane %v726_v8, 11  ;;  %v2603_v16 = vshll.u32 %v5739_v43, 16  ;;  %4201 = vmatprep.subr.bf16.mxu0 %v4548_v58  ;;  %v1131_v20 = vld [vmem:[#allocation2 + $0x8] sm:$0xf] }
 0x14a   : > { %v768_v62 = vsel %vm5488_vm10, %v760_v19, %v767_v51  ;;  %v3906_v35 = vcombine.low %v2575_v7, %v2584_v53  ;;  %v3899_v5 = vrot.slane %v2586_v27, 11  ;;  %v2602_v34 = vrot.slane %v2600_v39, 7  ;;  %v1132_v1 = vld [vmem:[#allocation2 + $0xc] sm:$0xf]  ;;  %v5792_v27 = vld [vmem:[#allocation2 + $0x94] sm:$0xf] }
 0x14b   : > { %v2596_v25 = vor.u32 %v2594_v32, %v2593_v49  ;;  %v2598_v33 = vrot.slane %v2593_v49, 4  ;;  %v548_v15 = vsel %vm5562_vm13, 0, %v547_v36  ;;  %v737_v3 = vsel %vm5488_vm10, %v3777_v37, %v5708_v54  ;;  %v5798_v39 = vld [vmem:[#allocation2 + $0x98] sm:$0xf] }
 0x14c   : > { %4187 = vmatprep.mubr.msk.bf16.mxu0 %vm852_vm5, %v3906_v35  ;;  %549 = vst [vmem:[#allocation2 + $0x90] sm:$0x8] %v548_v15  ;;  %v6412_v59 = vshll.u32 %v5544_v55, 16  ;;  %v782_v61 = vrot.slane %v5557_v40, 4  ;;  %v6414_v46 = vshll.u32 %v6413_v44, 16  ;;  %v3803_v42 = vcombine.low %v737_v3, %v746_v60  ;;  %4202 = vmatpush3.bf16.msra.mxu0 %v4548_v58 }
 0x14d   : > { %v607_v57 = vld [vmem:[#allocation2 + $0x7c] sm:$0x8]  ;;  %v2597_v54 = vsel %vm5488_vm10, %v3899_v5, %v2596_v25  ;;  %v2605_v47 = vor.u32 %v2603_v16, %v2602_v34  ;;  %v2613_v55 = vshrl.u32 %v5757_v10, 16  ;;  %4219 = vmatprep.subr.bf16.mxu0 %v5759_v22  ;;  %v2622_v48 = vshrl.u32 %v5776_v28, 16 }
 0x14e   : > { %v5770_v9 = vor.u32 %v6412_v59, %v5557_v40  ;;  %v789_v18 = vor.u32 %v6414_v46, %v5572_v13  ;;  %v2507_v38 = vld [vmem:[#allocation2 + $0x7c] sm:$0x8]  ;;  %v748_v19 = vshrl.u32 %v607_v57, 16  ;;  %v2616_v13 = vshll.u32 %v5757_v10, 16  ;;  %4092 = vmatmul.mubr.msk.bf16.gmra.mrb[8].mxu1 %vm852_vm5, %v3803_v42 }
 0x14f   : > { %v2608_v29 = vshrl.u32 %v2507_v38, 16  ;;  %v2606_v60 = vsel %vm5488_vm10, %v2598_v33, %v2605_v47  ;;  %v2615_v4 = vrot.slane %v2613_v55, 7  ;;  %v2625_v58 = vshll.u32 %v5776_v28, 16  ;;  %v1134_v34 = vld [vmem:[#allocation2 + $0x1c] sm:$0xf] }
 0x150   : > { %v790_v40 = vsel %vm5488_vm10, %v782_v61, %v789_v18  ;;  %v3778_v50 = vrot.slane %v748_v19, 11  ;;  %v3907_v26 = vcombine.low %v2597_v54, %v2606_v60  ;;  %v560_v51 = vsel %vm5289_vm2, 0, %v559_v17  ;;  %v1135_v19 = vld [vmem:[#allocation2 + $0x20] sm:$0xf] }
 0x151   : > { %v3900_v6 = vrot.slane %v2608_v29, 11  ;;  %v2618_v45 = vor.u32 %v2616_v13, %v2615_v4  ;;  %v2620_v0 = vrot.slane %v2615_v4, 4  ;;  %v2624_v8 = vrot.slane %v2622_v48, 7  ;;  %561 = vst [vmem:[#allocation2 + $0x10] sm:$0x1] %v560_v51 }
 0x152   : > { %v1159_v7 = vshrl.u32 %v1131_v20, 16  ;;  %v759_v32 = vsel %vm5488_vm10, %v3778_v50, %v5718_v31  ;;  %4188 = vmatmul.mubr.msk.bf16.gmra.mrb[4].mxu0 %vm852_vm5, %v3907_v26  ;;  %v1162_v36 = vshll.u32 %v1131_v20, 16  ;;  %v1168_v53 = vshll.u32 %v1132_v1, 16  ;;  %v1136_v26 = vld [vmem:[#allocation2 + $0x24] sm:$0x1] }
 0x153   : > { %v1172_v49 = vshrl.u32 %v1132_v1, 16  ;;  %v3804_v37 = vcombine.low %v759_v32, %v768_v62  ;;  %v610_v35 = vld [vmem:[#allocation2 + $0x90] sm:$0x8]  ;;  %v2619_v5 = vsel %vm5488_vm10, %v3900_v6, %v2618_v45  ;;  %v2627_v16 = vor.u32 %v2625_v58, %v2624_v8  ;;  %v550_v6 = vld [vmem:[#allocation2 + $0xa4] sm:$0x8] }
 0x154   : > { %v1161_v25 = vrot.slane %v1159_v7, 4  ;;  %v2510_v33 = vld [vmem:[#allocation2 + $0x90] sm:$0x8]  ;;  %v770_v15 = vshrl.u32 %v610_v35, 16  ;;  %v1164_v3 = vrot.slane %v1162_v36, 5  ;;  %v1170_v59 = vrot.slane %v1168_v53, 5 }
 0x155   : > { %v1174_v31 = vrot.slane %v1172_v49, 4  ;;  %4095 = vmatprep.mubr.msk.bf16.mxu1 %vm852_vm5, %v3804_v37  ;;  %v2628_v61 = vsel %vm5488_vm10, %v2620_v0, %v2627_v16  ;;  %v2630_v44 = vshrl.u32 %v2510_v33, 16  ;;  %v2635_v62 = vshrl.u32 %v5792_v27, 16  ;;  %v5821_v32 = vld [vmem:[#allocation2 + $0xa8] sm:$0xf] }
 0x156   : > { %v2638_v46 = vshll.u32 %v5792_v27, 16  ;;  %v3779_v18 = vrot.slane %v770_v15, 11  ;;  %v3908_v17 = vcombine.low %v2619_v5, %v2628_v61  ;;  %v1165_v42 = vor.u32 %v1164_v3, %v1161_v25  ;;  %v5828_v25 = vld [vmem:[#allocation2 + $0xac] sm:$0xf] }
 0x157   : > { %v1175_v57 = vor.u32 %v1174_v31, %v1170_v59  ;;  %v3901_v54 = vrot.slane %v2630_v44, 11  ;;  %v2637_v47 = vrot.slane %v2635_v62, 7  ;;  %v2644_v38 = vshrl.u32 %v5798_v39, 16 }
 0x158   : > { %v2647_v55 = vshll.u32 %v5798_v39, 16  ;;  %v781_v29 = vsel %vm5488_vm10, %v3779_v18, %v5770_v9  ;;  %4191 = vmatprep.mubr.msk.bf16.mxu0 %vm852_vm5, %v3908_v17  ;;  %v1133_v13 = vld [vmem:[#allocation2 + $0x10] sm:$0x1]  ;;  %v1166_v20 = vrot.slane %v1165_v42, 4  ;;  %v1183_v4 = vshrl.u32 %v1134_v34, 16 }
 0x159   : > { %v1176_v60 = vrot.slane %v1175_v57, 4  ;;  %v3805_v48 = vcombine.low %v781_v29, %v790_v40  ;;  %v1178_v58 = vshll.u32 %v1133_v13, 16  ;;  %v2640_v1 = vor.u32 %v2638_v46, %v2637_v47  ;;  %v1138_v46 = vld [vmem:[#allocation2 + $0x34] sm:$0xf]  ;;  %v1139_v18 = vld [vmem:[#allocation2 + $0x38] sm:$0x1] }
 0x15a   : > { %v2642_v50 = vrot.slane %v2637_v47, 4  ;;  %v6415_v51 = vstv %s5332_s15  ;;  %v1171_v9 = vsel %vm5463_vm9, %v1166_v20, %v1170_v59  ;;  %v2646_v0 = vrot.slane %v2644_v38, 7  ;;  %v1137_v59 = vld [vmem:[#allocation2 + $0x30] sm:$0xf]  ;;  %v512_v29 = vld [vmem:[%s402_s13] sm:$0xf] }
 0x15b   : > { %vm5815_vm14 = vcmp.eq.s32.totalorder %v6415_v51, 1  ;;  %v1185_v8 = vrot.slane %v1183_v4, 4  ;;  %v1186_v7 = vshll.u32 %v1134_v34, 16  ;;  %4096 = vmatmul.mubr.msk.bf16.gmra.mrb[12].mxu1 %vm852_vm5, %v3805_v48  ;;  %v1180_v40 = vrot.slane %v1178_v58, 5  ;;  %v513_v48 = vld [vmem:[%s402_s13 + $0x4] sm:$0xf] }
 0x15c   : > { %v2641_v36 = vsel %vm5488_vm10, %v3901_v54, %v2640_v1  ;;  %v1192_v53 = vshll.u32 %v1135_v19, 16  ;;  %v1196_v49 = vshrl.u32 %v1135_v19, 16  ;;  %v2649_v37 = vor.u32 %v2647_v55, %v2646_v0  ;;  %s6442_s13 = sld [smem:[#allocation51_spill]]  ;;  %s4677_s15 = scalar_lea.vmem %s6186_s30, 2048 }
 0x15d   : > { %v1188_v35 = vrot.slane %v1186_v7, 5  ;;  %v1202_v5 = vshll.u32 %v1136_v26, 16  ;;  %v551_v16 = vsel %vm5562_vm13, 0, %v550_v6  ;;  %v1181_v33 = vsel %vm5463_vm9, %v1176_v60, %v1180_v40  ;;  %v553_v6 = vld [vmem:[#allocation2 + $0xb8] sm:$0x8]  ;;  %v4549_v40 = vld [vmem:[#allocation9 + $0x38] sm:$0xff]   ;;  %p4678_p2 = scmp.ne.s32.totalorder %s6186_s30, %s4677_s15 }
 0x15e   : > { %v1194_v34 = vrot.slane %v1192_v53, 5  ;;  %v1198_v15 = vrot.slane %v1196_v49, 4  ;;  %552 = vst [vmem:[#allocation2 + $0xa4] sm:$0x8] %v551_v16  ;;  %v2657_v3 = vshrl.u32 %v5821_v32, 16  ;;  %v3816_v31 = vcombine.low %v1171_v9, %v1181_v33 }
 0x15f   : > { %v2650_v61 = vsel %vm5488_vm10, %v2642_v50, %v2649_v37  ;;  %v1189_v44 = vor.u32 %v1188_v35, %v1185_v8  ;;  %v1204_v62 = vrot.slane %v1202_v5, 5  ;;  %v2660_v54 = vshll.u32 %v5821_v32, 16  ;;  %v1140_v7 = vld [vmem:[#allocation2 + $0x44] sm:$0xf]  ;;  %v1141_v5 = vld [vmem:[#allocation2 + $0x48] sm:$0xf]  ;;  %p4679_p0 = pnand %p4678_p2, %p6443_p6 }
 0x160   : > { %v3909_v17 = vcombine.low %v2641_v36, %v2650_v61  ;;  %v1199_v42 = vor.u32 %v1198_v15, %v1194_v34  ;;  %v2659_v57 = vrot.slane %v2657_v3, 7  ;;  %4103 = vmatprep.mubr.msk.bf16.mxu1 %vm852_vm5, %v3816_v31  ;;  %v2666_v38 = vshrl.u32 %v5828_v25, 16  ;;  %v1142_v3 = vld [vmem:[#allocation2 + $0x4c] sm:$0x1] }
 0x161   : > { %v1190_v47 = vrot.slane %v1189_v44, 4  ;;  %v2669_v55 = vshll.u32 %v5828_v25, 16  ;;  %v1207_v19 = vshrl.u32 %v1137_v59, 16  ;;  %v1210_v4 = vshll.u32 %v1137_v59, 16  ;;  %p4680_p10 = pneg %p4679_p0 }
 0x162   : > { %4192 = vmatmul.mubr.msk.bf16.gmra.mrb[8].mxu0 %vm852_vm5, %v3909_v17  ;;  %v1200_v13 = vrot.slane %v1199_v42, 4  ;;  %v2662_v20 = vor.u32 %v2660_v54, %v2659_v57  ;;  %v2664_v60 = vrot.slane %v2659_v57, 4  ;;  %v2668_v1 = vrot.slane %v2666_v38, 7  ;;  %v1143_v38 = vld [vmem:[#allocation2 + $0x58] sm:$0xf]  ;;  %s6184_s11 = scalar_lea.hbm %s6442_s13, %s3964_s2 }
 0x163   : > { %v1195_v58 = vsel %vm5463_vm9, %v1190_v47, %v1194_v34  ;;  %v1209_v50 = vrot.slane %v1207_v19, 4  ;;  %v1216_v26 = vshll.u32 %v1138_v46, 16  ;;  %v1212_v9 = vrot.slane %v1210_v4, 5  ;;  %v1144_v19 = vld [vmem:[#allocation2 + $0x5c] sm:$0xf] }
 0x164   : > { %v1205_v51 = vsel %vm5463_vm9, %v1200_v13, %v1204_v62  ;;  %v1220_v0 = vshrl.u32 %v1138_v46, 16  ;;  %v1226_v8 = vshll.u32 %v1139_v18, 16  ;;  %v2671_v49 = vor.u32 %v2669_v55, %v2668_v1 }
 0x165   : > { %v3817_v36 = vcombine.low %v1195_v58, %v1205_v51  ;;  %v2513_v53 = vld [vmem:[#allocation2 + $0xa4] sm:$0x8]  ;;  %v1218_v37 = vrot.slane %v1216_v26, 5  ;;  %v518_v35 = vsel %vm5815_vm14, %v512_v29, 0  ;;  %v1213_v33 = vor.u32 %v1212_v9, %v1209_v50 }
 0x166   : > { %v2652_v16 = vshrl.u32 %v2513_v53, 16  ;;  %v1222_v34 = vrot.slane %v1220_v0, 4  ;;  %v1228_v15 = vrot.slane %v1226_v8, 5  ;;  %521 = vst.msk [vmem:[#allocation2 + $0xbc] sm:$0xf] %vm485_vm3, %v518_v35  ;;  %v2672_v59 = vsel %vm5488_vm10, %v2664_v60, %v2671_v49  ;;  %v5871_v0 = vld [vmem:[#allocation9 + $0x40] sm:$0xff]  }
 0x167   : > { %4104 = vmatmul.mubr.msk.bf16.vlgmr.msra.gmra.mrb[0].mxu1 %vm852_vm5, %v3817_v36  ;;  %v519_v31 = vsel %vm5815_vm14, %v513_v48, 0  ;;  %v554_v61 = vsel %vm5562_vm13, 0, %v553_v6  ;;  %v1231_v44 = vshrl.u32 %v1140_v7, 16  ;;  %v1214_v46 = vrot.slane %v1213_v33, 4 }
 0x168   : > { %4120 = vmatpush3.bf16.msra.mxu1 %v5657_v11  ;;  %v3902_v62 = vrot.slane %v2652_v16, 11  ;;  %v1223_v18 = vor.u32 %v1222_v34, %v1218_v37  ;;  %522 = vst.msk [vmem:[#allocation2 + $0xc0] sm:$0xf] %vm485_vm3, %v519_v31  ;;  %555 = vst [vmem:[#allocation2 + $0xb8] sm:$0x8] %v554_v61  ;;  %v1234_v17 = vshll.u32 %v1140_v7, 16  ;;  %v3922_v1 = vcombine.low %v5635_v24, %v5637_v63 }
 0x169   : > { %v1233_v42 = vrot.slane %v1231_v44, 4  ;;  %v1240_v57 = vshll.u32 %v1141_v5, 16  ;;  %v1244_v54 = vshrl.u32 %v1141_v5, 16  ;;  %v1250_v47 = vshll.u32 %v1142_v3, 16  ;;  %4121 = vmatprep.subr.bf16.mxu1 %v4549_v40 }
 0x16a   : > { %v2663_v56 = vsel %vm5488_vm10, %v3902_v62, %v2662_v20  ;;  %v1219_v45 = vsel %vm5463_vm9, %v1214_v46, %v1218_v37  ;;  %v1224_v11 = vrot.slane %v1223_v18, 4  ;;  %v1236_v55 = vrot.slane %v1234_v17, 5  ;;  %v1146_v46 = vld [vmem:[#allocation2 + $0x6c] sm:$0xf] }
 0x16b   : > { %v3910_v29 = vcombine.low %v2663_v56, %v2672_v59  ;;  %v1242_v13 = vrot.slane %v1240_v57, 5  ;;  %v1246_v60 = vrot.slane %v1244_v54, 4  ;;  %v1252_v4 = vrot.slane %v1250_v47, 5  ;;  %v1145_v59 = vld [vmem:[#allocation2 + $0x60] sm:$0x1] }
 0x16c   : > { %v1229_v48 = vsel %vm5463_vm9, %v1224_v11, %v1228_v15  ;;  %v1237_v58 = vor.u32 %v1236_v55, %v1233_v42  ;;  %v1255_v50 = vshrl.u32 %v1143_v38, 16  ;;  %4122 = vmatpush3.bf16.msra.mxu1 %v4549_v40  ;;  %v1258_v51 = vshll.u32 %v1143_v38, 16  ;;  %v1147_v54 = vld [vmem:[#allocation2 + $0x70] sm:$0xf] }
 0x16d   : > { %4195 = vmatprep.mubr.msk.bf16.mxu0 %vm852_vm5, %v3910_v29  ;;  %v3818_v20 = vcombine.low %v1219_v45, %v1229_v48  ;;  %v5869_v26 = vld [vmem:[#allocation2 + $0xbc] sm:$0xf]  ;;  %v1247_v6 = vor.u32 %v1246_v60, %v1242_v13  ;;  %v1264_v9 = vshll.u32 %v1144_v19, 16  ;;  %4239 = vmatprep.subr.bf16.mxu1 %v5871_v0  ;;  %v3923_v5 = vcombine.low %v5673_v41, %v5685_v30  ;;  %v1148_v29 = vld [vmem:[#allocation2 + $0x74] sm:$0x1] }
 0x16e   : > { %v2679_v8 = vshrl.u32 %v5869_v26, 16  ;;  %v2682_v7 = vshll.u32 %v5869_v26, 16  ;;  %v1238_v36 = vrot.slane %v1237_v58, 4  ;;  %v1257_v53 = vrot.slane %v1255_v50, 4 }
 0x16f   : > { %4107 = vmatprep.mubr.msk.bf16.mxu1 %vm852_vm5, %v3818_v20  ;;  %v2516_v40 = vld [vmem:[#allocation2 + $0xb8] sm:$0x8]  ;;  %v5877_v49 = vld [vmem:[#allocation2 + $0xc0] sm:$0xf]  ;;  %v1248_v37 = vrot.slane %v1247_v6, 4  ;;  %v1260_v35 = vrot.slane %v1258_v51, 5  ;;  %v3924_v16 = vcombine.low %v5693_v23, %v5702_v52 }
 0x170   : > { %v2674_v33 = vshrl.u32 %v2516_v40, 16  ;;  %v2681_v34 = vrot.slane %v2679_v8, 7  ;;  %v2688_v15 = vshrl.u32 %v5877_v49, 16  ;;  %v2691_v3 = vshll.u32 %v5877_v49, 16  ;;  %v1149_v20 = vld [vmem:[#allocation2 + $0x80] sm:$0xf] }
 0x171   : > { %v1243_v31 = vsel %vm5463_vm9, %v1238_v36, %v1242_v13  ;;  %v1253_v61 = vsel %vm5463_vm9, %v1248_v37, %v1252_v4  ;;  %v1261_v44 = vor.u32 %v1260_v35, %v1257_v53  ;;  %v1266_v62 = vrot.slane %v1264_v9, 5  ;;  %v1150_v8 = vld [vmem:[#allocation2 + $0x84] sm:$0xf]  ;;  %v6421_v52 = vld [vmem:[#allocation38_spill] sm:$0xff] }
 0x172   : > { %v3903_v18 = vrot.slane %v2674_v33, 11  ;;  %v2684_v17 = vor.u32 %v2682_v7, %v2681_v34  ;;  %v2686_v42 = vrot.slane %v2681_v34, 4  ;;  %v2690_v57 = vrot.slane %v2688_v15, 7  ;;  %v1151_v33 = vld [vmem:[#allocation2 + $0x88] sm:$0x1] }
 0x173   : > { %v3819_v47 = vcombine.low %v1243_v31, %v1253_v61  ;;  %v1262_v38 = vrot.slane %v1261_v44, 4  ;;  %v1268_v56 = vshrl.u32 %v1144_v19, 16  ;;  %v1274_v45 = vshll.u32 %v1145_v59, 16 }
 0x174   : > { %v2685_v11 = vsel %vm5488_vm10, %v3903_v18, %v2684_v17  ;;  %v2693_v55 = vor.u32 %v2691_v3, %v2690_v57  ;;  %v1279_v13 = vshrl.u32 %v1146_v46, 16  ;;  %v1282_v60 = vshll.u32 %v1146_v46, 16  ;;  %v1152_v17 = vld [vmem:[#allocation2 + $0x94] sm:$0xf] }
 0x175   : > { %4108 = vmatmul.mubr.msk.bf16.gmra.mrb[4].mxu1 %vm852_vm5, %v3819_v47  ;;  %v1267_v4 = vsel %vm5463_vm9, %v1262_v38, %v1266_v62  ;;  %v1270_v48 = vrot.slane %v1268_v56, 4  ;;  %v1276_v58 = vrot.slane %v1274_v45, 5  ;;  %v1288_v50 = vshll.u32 %v1147_v54, 16  ;;  %v1153_v38 = vld [vmem:[#allocation2 + $0x98] sm:$0xf] }
 0x176   : > { %v2694_v19 = vsel %vm5488_vm10, %v2686_v42, %v2693_v55  ;;  %v1281_v6 = vrot.slane %v1279_v13, 4  ;;  %v1284_v51 = vrot.slane %v1282_v60, 5  ;;  %v1292_v9 = vshrl.u32 %v1147_v54, 16 }
 0x177   : > { %v3911_v7 = vcombine.low %v2685_v11, %v2694_v19  ;;  %v1271_v36 = vor.u32 %v1270_v48, %v1266_v62  ;;  %v1290_v53 = vrot.slane %v1288_v50, 5  ;;  %v1298_v40 = vshll.u32 %v1148_v29, 16  ;;  %v1154_v29 = vld [vmem:[#allocation2 + $0x9c] sm:$0x1]  ;;  %v1528_v50 = vld [vmem:[#allocation2 + $0x18] sm:$0x8] }
 0x178   : > { %v1285_v37 = vor.u32 %v1284_v51, %v1281_v6  ;;  %v1294_v35 = vrot.slane %v1292_v9, 4  ;;  %v1303_v34 = vshrl.u32 %v1149_v20, 16  ;;  %v1306_v15 = vshll.u32 %v1149_v20, 16  ;;  %v4551_v9 = vld [vmem:[#allocation9 + $0x88] sm:$0xff]  }
 0x179   : > { %4196 = vmatmul.mubr.msk.bf16.gmra.mrb[12].mxu0 %vm852_vm5, %v3911_v7  ;;  %v1272_v3 = vrot.slane %v1271_v36, 4  ;;  %v1300_v59 = vrot.slane %v1298_v40, 5  ;;  %v1312_v31 = vshll.u32 %v1150_v8, 16  ;;  %v1316_v61 = vshrl.u32 %v1150_v8, 16  ;;  %v1531_v40 = vld [vmem:[#allocation2 + $0x2c] sm:$0x8] }
 0x17a   : > { %4203 = vmatprep.mubr.msk.bf16.mxu0 %vm852_vm5, %v3922_v1  ;;  %v1286_v44 = vrot.slane %v1285_v37, 4  ;;  %v1295_v62 = vor.u32 %v1294_v35, %v1290_v53  ;;  %v1305_v46 = vrot.slane %v1303_v34, 4  ;;  %v1308_v18 = vrot.slane %v1306_v15, 5  ;;  %v1534_v15 = vld [vmem:[#allocation2 + $0x40] sm:$0x8] }
 0x17b   : > { %v1277_v42 = vsel %vm5463_vm9, %v1272_v3, %v1276_v58  ;;  %v1314_v57 = vrot.slane %v1312_v31, 5  ;;  %v1318_v54 = vrot.slane %v1316_v61, 4  ;;  %v1322_v47 = vshll.u32 %v1151_v33, 16  ;;  %v6418_v3 = vld [vmem:[#allocation33_spill] sm:$0xff] }
 0x17c   : > { %v3820_v56 = vcombine.low %v1267_v4, %v1277_v42  ;;  %v1291_v45 = vsel %vm5463_vm9, %v1286_v44, %v1290_v53  ;;  %v1296_v11 = vrot.slane %v1295_v62, 4  ;;  %v1309_v24 = vor.u32 %v1308_v18, %v1305_v46 }
 0x17d   : > { %v1319_v63 = vor.u32 %v1318_v54, %v1314_v57  ;;  %v1324_v1 = vrot.slane %v1322_v47, 5  ;;  %v3925_v55 = vcombine.low %v5729_v21, %v5739_v43  ;;  %v1327_v13 = vshrl.u32 %v1152_v17, 16 }
 0x17e   : > { %4111 = vmatprep.mubr.msk.bf16.mxu1 %vm852_vm5, %v3820_v56  ;;  %v1301_v60 = vsel %vm5463_vm9, %v1296_v11, %v1300_v59  ;;  %v1310_v48 = vrot.slane %v1309_v24, 4  ;;  %v1330_v58 = vshll.u32 %v1152_v17, 16  ;;  %v1336_v4 = vshll.u32 %v1153_v38, 16  ;;  %v6419_v59 = vld [vmem:[#allocation31_spill] sm:$0xff]  ;;  %v1537_v24 = vld [vmem:[#allocation2 + $0x54] sm:$0x8] }
 0x17f   : > { %v3821_v20 = vcombine.low %v1291_v45, %v1301_v60  ;;  %v1320_v19 = vrot.slane %v1319_v63, 4  ;;  %v1329_v6 = vrot.slane %v1327_v13, 4  ;;  %v1340_v51 = vshrl.u32 %v1153_v38, 16  ;;  %v6425_v38 = vld [vmem:[#allocation41_spill] sm:$0xff]  ;;  %v6426_v56 = vld [vmem:[#allocation35_spill] sm:$0xff] }
 0x180   : > { %v1315_v8 = vsel %vm5463_vm9, %v1310_v48, %v1314_v57  ;;  %v1332_v7 = vrot.slane %v1330_v58, 5  ;;  %v1338_v36 = vrot.slane %v1336_v4, 5  ;;  %v1346_v53 = vshll.u32 %v1154_v29, 16  ;;  %v6424_v57 = vld [vmem:[#allocation32_spill] sm:$0xff]  ;;  %v6429_v4 = vld [vmem:[#allocation42_spill] sm:$0xff] }
 0x181   : > { %4204 = vmatmul.mubr.msk.bf16.vlgmr.msra.gmra.mrb[0].mxu0 %vm852_vm5, %v3923_v5  ;;  %4112 = vmatmul.mubr.msk.bf16.gmra.mrb[8].mxu1 %vm852_vm5, %v3821_v20  ;;  %v1325_v37 = vsel %vm5463_vm9, %v1320_v19, %v1324_v1  ;;  %v1342_v35 = vrot.slane %v1340_v51, 4  ;;  %v3926_v33 = vcombine.low %v5757_v10, %v5776_v28  ;;  %v1553_v34 = vshrl.u32 %v1528_v50, 16  ;;  %v6428_v48 = vld [vmem:[#allocation36_spill] sm:$0xff]  ;;  %v6430_v50 = vld [vmem:[#allocation37_spill] sm:$0xff]  ;;  %v3067_v51 = vld [vmem:[#allocation2 + $0x30] sm:$0xf] }
 0x182   : > { %4220 = vmatpush3.bf16.msra.mxu0 %v5759_v22  ;;  %4207 = vmatprep.mubr.msk.bf16.mxu0 %vm852_vm5, %v3924_v16  ;;  %v3822_v41 = vcombine.low %v1315_v8, %v1325_v37  ;;  %v1333_v30 = vor.u32 %v1332_v7, %v1329_v6  ;;  %v1348_v5 = vrot.slane %v1346_v53, 5  ;;  %v6420_v31 = vrot.slane %v6419_v59, 4  ;;  %v6422_v16 = vld [vmem:[#allocation34_spill] sm:$0xff] }
 0x183   : > { %v1343_v44 = vor.u32 %v1342_v35, %v1338_v36  ;;  %v3834_v10 = vrot.slane %v1553_v34, 11  ;;  %v3927_v28 = vcombine.low %v5792_v27, %v5798_v39  ;;  %4221 = vmatprep.subr.bf16.mxu0 %v4551_v9  ;;  %v1575_v22 = vshrl.u32 %v1531_v40, 16  ;;  %v3068_v53 = vld [vmem:[#allocation2 + $0x34] sm:$0xf]  ;;  %v3069_v40 = vld [vmem:[#allocation2 + $0x38] sm:$0x1] }
 0x184   : > { %v1573_v61 = vsel %vm5488_vm10, %v6420_v31, %v6418_v3  ;;  %4115 = vmatprep.mubr.msk.bf16.mxu1 %vm852_vm5, %v3822_v41  ;;  %v1334_v23 = vrot.slane %v1333_v30, 4  ;;  %v6423_v62 = vrot.slane %v6422_v16, 4  ;;  %v3928_v18 = vcombine.low %v5821_v32, %v5828_v25  ;;  %v6432_v35 = vld [vmem:[#allocation43_spill] sm:$0xff]  ;;  %v6436_v3 = vld [vmem:[#allocation40_spill] sm:$0xff] }
 0x185   : > { %v1597_v17 = vshrl.u32 %v1534_v15, 16  ;;  %v1344_v42 = vrot.slane %v1343_v44, 4  ;;  %v1564_v54 = vsel %vm5488_vm10, %v3834_v10, %v6424_v57  ;;  %v3835_v47 = vrot.slane %v1575_v22, 11  ;;  %v6433_v34 = vld [vmem:[#allocation39_spill] sm:$0xff]  ;;  %v5977_v10 = vld [vmem:[#allocation2 + $0x6c] sm:$0xf] }
 0x186   : > { %v1595_v46 = vsel %vm5488_vm10, %v6423_v62, %v6421_v52  ;;  %v6427_v45 = vshll.u32 %v6426_v56, 16  ;;  %v1339_v63 = vsel %vm5463_vm9, %v1334_v23, %v1338_v36  ;;  %v3842_v1 = vcombine.low %v1564_v54, %v1573_v61  ;;  %4222 = vmatpush3.bf16.msra.mxu0 %v4551_v9  ;;  %v1540_v61 = vld [vmem:[#allocation2 + $0x68] sm:$0x8]  ;;  %v5982_v62 = vld [vmem:[#allocation2 + $0x70] sm:$0xf] }
 0x187   : > { %v3836_v29 = vrot.slane %v1597_v17, 11  ;;  %v1609_v13 = vrot.slane %v6425_v38, 4  ;;  %v1349_v60 = vsel %vm5463_vm9, %v1344_v42, %v1348_v5  ;;  %v1586_v58 = vsel %vm5488_vm10, %v3835_v47, %v6428_v48  ;;  %v6435_v5 = vld [vmem:[#allocation44_spill] sm:$0xff]  ;;  %v1543_v39 = vld [vmem:[#allocation2 + $0x7c] sm:$0x8] }
 0x188   : > { %v1607_v11 = vor.u32 %v6427_v45, %v6425_v38  ;;  %v6431_v20 = vshll.u32 %v6430_v50, 16  ;;  %v3929_v6 = vcombine.low %v5869_v26, %v5877_v49  ;;  %v3823_v8 = vcombine.low %v1339_v63, %v1349_v60  ;;  %v3070_v57 = vld [vmem:[#allocation2 + $0x44] sm:$0xf]  ;;  %v3071_v45 = vld [vmem:[#allocation2 + $0x48] sm:$0xf] }
 0x189   : > { %v3843_v9 = vcombine.low %v1586_v58, %v1595_v46  ;;  %v1619_v36 = vshrl.u32 %v1537_v24, 16  ;;  %4208 = vmatmul.mubr.msk.bf16.gmra.mrb[4].mxu0 %vm852_vm5, %v3925_v55  ;;  %v6434_v15 = vshll.u32 %v6433_v34, 16  ;;  %v1631_v30 = vrot.slane %v6432_v35, 4 }
 0x18a   : > { %v1616_v19 = vor.u32 %v6431_v20, %v6429_v4  ;;  %v1608_v7 = vsel %vm5488_vm10, %v3836_v29, %v1607_v11  ;;  %v6437_v59 = vshll.u32 %v6436_v3, 16  ;;  %4116 = vmatmul.mubr.msk.bf16.gmra.mrb[12].mxu1 %vm852_vm5, %v3823_v8  ;;  %4211 = vmatprep.mubr.msk.bf16.mxu0 %vm852_vm5, %v3926_v33  ;;  %v3092_v55 = vshrl.u32 %v3067_v51, 16  ;;  %v3072_v8 = vld [vmem:[#allocation2 + $0x4c] sm:$0x1] }
 0x18b   : > { %v1629_v41 = vor.u32 %v6434_v15, %v6432_v35  ;;  %v3837_v43 = vrot.slane %v1619_v36, 11  ;;  %v3095_v44 = vshll.u32 %v3067_v51, 16  ;;  %4123 = vmatprep.mubr.msk.bf16.mxu1 %vm852_vm5, %v3842_v1  ;;  %v3101_v23 = vshll.u32 %v3068_v53, 16  ;;  %v4558_v15 = vld [vmem:[#allocation9 + $0x48] sm:$0xff]  }
 0x18c   : > { %v1617_v37 = vsel %vm5488_vm10, %v1609_v13, %v1616_v19  ;;  %v1638_v31 = vor.u32 %v6437_v59, %v6435_v5  ;;  %v3105_v52 = vshrl.u32 %v3068_v53, 16  ;;  %v3111_v16 = vshll.u32 %v3069_v40, 16  ;;  %v6011_v5 = vld [vmem:[#allocation2 + $0x84] sm:$0xf] }
 0x18d   : > { %v3844_v21 = vcombine.low %v1608_v7, %v1617_v37  ;;  %v1630_v46 = vsel %vm5488_vm10, %v3837_v43, %v1629_v41  ;;  %v3094_v33 = vrot.slane %v3092_v55, 4  ;;  %v3097_v17 = vrot.slane %v3095_v44, 5 }
 0x18e   : > { %v1639_v22 = vsel %vm5488_vm10, %v1631_v30, %v1638_v31  ;;  %v1641_v42 = vshrl.u32 %v1540_v61, 16  ;;  %v3103_v47 = vrot.slane %v3101_v23, 5  ;;  %v3107_v38 = vrot.slane %v3105_v52, 4  ;;  %v3073_v61 = vld [vmem:[#allocation2 + $0x58] sm:$0xf] }
 0x18f   : > { %v5986_v54 = vcombine.low %v1630_v46, %v1639_v22  ;;  %v3113_v56 = vrot.slane %v3111_v16, 5  ;;  %v3098_v11 = vor.u32 %v3097_v17, %v3094_v33  ;;  %v1646_v63 = vshrl.u32 %v5977_v10, 16  ;;  %v3074_v46 = vld [vmem:[#allocation2 + $0x5c] sm:$0xf] }
 0x190   : > { %v3838_v24 = vrot.slane %v1641_v42, 11  ;;  %v1649_v1 = vshll.u32 %v5977_v10, 16  ;;  %v3108_v29 = vor.u32 %v3107_v38, %v3103_v47  ;;  %v1655_v13 = vshrl.u32 %v5982_v62, 16  ;;  %v3075_v42 = vld [vmem:[#allocation2 + $0x60] sm:$0x1] }
 0x191   : > { %v1658_v60 = vshll.u32 %v5982_v62, 16  ;;  %v3116_v48 = vshrl.u32 %v3070_v57, 16  ;;  %v3099_v58 = vrot.slane %v3098_v11, 4  ;;  %v1648_v4 = vrot.slane %v1646_v63, 7  ;;  %4212 = vmatmul.mubr.msk.bf16.gmra.mrb[8].mxu0 %vm852_vm5, %v3927_v28  ;;  %v6003_v28 = vld [vmem:[#allocation2 + $0x80] sm:$0xf] }
 0x192   : > { %v3119_v50 = vshll.u32 %v3070_v57, 16  ;;  %v3125_v20 = vshll.u32 %v3071_v45, 16  ;;  %v3109_v19 = vrot.slane %v3108_v29, 4  ;;  %v1657_v51 = vrot.slane %v1655_v13, 7  ;;  %4124 = vmatmul.mubr.msk.bf16.vlgmr.msra.gmra.mrb[0].mxu1 %vm852_vm5, %v3843_v9  ;;  %4215 = vmatprep.mubr.msk.bf16.mxu0 %vm852_vm5, %v3928_v18  ;;  %v6027_v63 = vld [vmem:[#allocation2 + $0x94] sm:$0xf] }
 0x193   : > { %v3118_v7 = vrot.slane %v3116_v48, 4  ;;  %v3129_v36 = vshrl.u32 %v3071_v45, 16  ;;  %v3104_v53 = vsel %vm5463_vm9, %v3099_v58, %v3103_v47  ;;  %v1651_v40 = vor.u32 %v1649_v1, %v1648_v4  ;;  %4241 = vmatpush3.bf16.msra.mxu1 %v5871_v0  ;;  %4127 = vmatprep.mubr.msk.bf16.mxu1 %vm852_vm5, %v3844_v21  ;;  %v6035_v58 = vld [vmem:[#allocation2 + $0x98] sm:$0xf] }
 0x194   : > { %v1653_v37 = vrot.slane %v1648_v4, 4  ;;  %v3121_v27 = vrot.slane %v3119_v50, 5  ;;  %v3114_v9 = vsel %vm5463_vm9, %v3109_v19, %v3113_v56  ;;  %v1660_v35 = vor.u32 %v1658_v60, %v1657_v51  ;;  %4240 = vmatprep.subr.bf16.mxu1 %v4558_v15  ;;  %v3076_v19 = vld [vmem:[#allocation2 + $0x6c] sm:$0xf] }
 0x195   : > { %v3127_v32 = vrot.slane %v3125_v20, 5  ;;  %v3131_v25 = vrot.slane %v3129_v36, 4  ;;  %v3940_v18 = vcombine.low %v3104_v53, %v3114_v9  ;;  %v1652_v34 = vsel %vm5488_vm10, %v3838_v24, %v1651_v40  ;;  %v1546_v24 = vld [vmem:[#allocation2 + $0x90] sm:$0x8] }
 0x196   : > { %v3122_v41 = vor.u32 %v3121_v27, %v3118_v7  ;;  %v3135_v30 = vshll.u32 %v3072_v8, 16  ;;  %v1661_v0 = vsel %vm5488_vm10, %v1653_v37, %v1660_v35  ;;  %v1663_v59 = vshrl.u32 %v1543_v39, 16  ;;  %v3077_v39 = vld [vmem:[#allocation2 + $0x70] sm:$0xf] }
 0x197   : > { %v3132_v3 = vor.u32 %v3131_v25, %v3127_v32  ;;  %v1668_v31 = vshrl.u32 %v6003_v28, 16  ;;  %v3846_v21 = vcombine.low %v1652_v34, %v1661_v0  ;;  %v1671_v44 = vshll.u32 %v6003_v28, 16  ;;  %4242 = vmatpush3.bf16.msra.mxu1 %v4558_v15  ;;  %v3078_v25 = vld [vmem:[#allocation2 + $0x74] sm:$0x1]  ;;  %v1549_v0 = vld [vmem:[#allocation2 + $0xa4] sm:$0x8] }
 0x198   : > { %v3123_v43 = vrot.slane %v3122_v41, 4  ;;  %v3137_v55 = vrot.slane %v3135_v30, 5  ;;  %v3839_v23 = vrot.slane %v1663_v59, 11  ;;  %v1677_v16 = vshrl.u32 %v6011_v5, 16 }
 0x199   : > { %v3133_v22 = vrot.slane %v3132_v3, 4  ;;  %v1670_v52 = vrot.slane %v1668_v31, 7  ;;  %v1680_v17 = vshll.u32 %v6011_v5, 16  ;;  %v3140_v57 = vshrl.u32 %v3073_v61, 16  ;;  %4216 = vmatmul.mubr.msk.bf16.gmra.mrb[12].mxu0 %vm852_vm5, %v3929_v6 }
 0x19a   : > { %v3128_v33 = vsel %vm5463_vm9, %v3123_v43, %v3127_v32  ;;  %v3143_v47 = vshll.u32 %v3073_v61, 16  ;;  %v1679_v11 = vrot.slane %v1677_v16, 7  ;;  %4128 = vmatmul.mubr.msk.bf16.gmra.mrb[4].mxu1 %vm852_vm5, %v5986_v54  ;;  %4223 = vmatprep.mubr.msk.bf16.mxu0 %vm852_vm5, %v3940_v18  ;;  %v3149_v26 = vshll.u32 %v3074_v46, 16 }
 0x19b   : > { %v3138_v38 = vsel %vm5463_vm9, %v3133_v22, %v3137_v55  ;;  %v1673_v56 = vor.u32 %v1671_v44, %v1670_v52  ;;  %v1675_v45 = vrot.slane %v1670_v52, 4  ;;  %v3142_v29 = vrot.slane %v3140_v57, 4  ;;  %4131 = vmatprep.mubr.msk.bf16.mxu1 %vm852_vm5, %v3846_v21  ;;  %v6049_v22 = vld [vmem:[#allocation2 + $0xa8] sm:$0xf] }
 0x19c   : > { %v3941_v1 = vcombine.low %v3128_v33, %v3138_v38  ;;  %v3145_v13 = vrot.slane %v3143_v47, 5  ;;  %v1682_v6 = vor.u32 %v1680_v17, %v1679_v11  ;;  %v3153_v60 = vshrl.u32 %v3074_v46, 16  ;;  %v6053_v46 = vld [vmem:[#allocation2 + $0xac] sm:$0xf]  ;;  %v3079_v38 = vld [vmem:[#allocation2 + $0x80] sm:$0xf] }
 0x19d   : > { %v1674_v49 = vsel %vm5488_vm10, %v3839_v23, %v1673_v56  ;;  %v3159_v48 = vshll.u32 %v3075_v42, 16  ;;  %v3151_v50 = vrot.slane %v3149_v26, 5  ;;  %v1685_v20 = vshrl.u32 %v1546_v24, 16 }
 0x19e   : > { %v3146_v4 = vor.u32 %v3145_v13, %v3142_v29  ;;  %v1690_v54 = vshrl.u32 %v6027_v63, 16  ;;  %v1683_v51 = vsel %vm5488_vm10, %v1675_v45, %v1682_v6  ;;  %v3155_v8 = vrot.slane %v3153_v60, 4 }
 0x19f   : > { %v3161_v7 = vrot.slane %v3159_v48, 5  ;;  %v1693_v36 = vshll.u32 %v6027_v63, 16  ;;  %v3847_v53 = vcombine.low %v1674_v49, %v1683_v51  ;;  %v3840_v37 = vrot.slane %v1685_v20, 11 }
 0x1a0   : > { %v3147_v40 = vrot.slane %v3146_v4, 4  ;;  %v1692_v27 = vrot.slane %v1690_v54, 7  ;;  %v3156_v9 = vor.u32 %v3155_v8, %v3151_v50  ;;  %v1699_v35 = vshrl.u32 %v6035_v58, 16 }
 0x1a1   : > { %v1702_v32 = vshll.u32 %v6035_v58, 16  ;;  %v3164_v18 = vshrl.u32 %v3076_v19, 16  ;;  %v3167_v30 = vshll.u32 %v3076_v19, 16  ;;  %4224 = vmatmul.mubr.msk.bf16.vlgmr.msra.gmra.mrb[0].mxu0 %vm852_vm5, %v3941_v1  ;;  %v3173_v61 = vshll.u32 %v3077_v39, 16  ;;  %v3080_v1 = vld [vmem:[#allocation2 + $0x84] sm:$0xf] }
 0x1a2   : > { %v3152_v34 = vsel %vm5463_vm9, %v3147_v40, %v3151_v50  ;;  %v1695_v15 = vor.u32 %v1693_v36, %v1692_v27  ;;  %v1697_v41 = vrot.slane %v1692_v27, 4  ;;  %v3157_v3 = vrot.slane %v3156_v9, 4  ;;  %4132 = vmatmul.mubr.msk.bf16.gmra.mrb[8].mxu1 %vm852_vm5, %v3847_v53  ;;  %v3081_v19 = vld [vmem:[#allocation2 + $0x88] sm:$0x1]  ;;  %v3082_v40 = vld [vmem:[#allocation2 + $0x94] sm:$0xf] }
 0x1a3   : > { %v1701_v59 = vrot.slane %v1699_v35, 7  ;;  %v3166_v31 = vrot.slane %v3164_v18, 4  ;;  %v3169_v43 = vrot.slane %v3167_v30, 5  ;;  %v3177_v55 = vshrl.u32 %v3077_v39, 16 }
 0x1a4   : > { %v1696_v21 = vsel %vm5488_vm10, %v3840_v37, %v1695_v15  ;;  %v3183_v44 = vshll.u32 %v3078_v25, 16  ;;  %v3162_v23 = vsel %vm5463_vm9, %v3157_v3, %v3161_v7  ;;  %v3175_v16 = vrot.slane %v3173_v61, 5 }
 0x1a5   : > { %v1704_v52 = vor.u32 %v1702_v32, %v1701_v59  ;;  %v1707_v33 = vshrl.u32 %v1549_v0, 16  ;;  %v3942_v17 = vcombine.low %v3152_v34, %v3162_v23  ;;  %v3170_v42 = vor.u32 %v3169_v43, %v3166_v31  ;;  %v3083_v34 = vld [vmem:[#allocation2 + $0x98] sm:$0xf]  ;;  %v3084_v0 = vld [vmem:[#allocation2 + $0x9c] sm:$0x1] }
 0x1a6   : > { %v3179_v57 = vrot.slane %v3177_v55, 4  ;;  %v3185_v47 = vrot.slane %v3183_v44, 5  ;;  %v1712_v11 = vshrl.u32 %v6049_v22, 16  ;;  %v1715_v24 = vshll.u32 %v6049_v22, 16  ;;  %v3085_v43 = vld [vmem:[#allocation2 + $0xa8] sm:$0xf] }
 0x1a7   : > { %v1705_v56 = vsel %vm5488_vm10, %v1697_v41, %v1704_v52  ;;  %v3841_v45 = vrot.slane %v1707_v33, 11  ;;  %4227 = vmatprep.mubr.msk.bf16.mxu0 %vm852_vm5, %v3942_v17  ;;  %v3171_v13 = vrot.slane %v3170_v42, 4  ;;  %v1721_v49 = vshrl.u32 %v6053_v46, 16 }
 0x1a8   : > { %v3848_v29 = vcombine.low %v1696_v21, %v1705_v56  ;;  %v3180_v26 = vor.u32 %v3179_v57, %v3175_v16  ;;  %v1714_v6 = vrot.slane %v1712_v11, 7  ;;  %v1724_v60 = vshll.u32 %v6053_v46, 16 }
 0x1a9   : > { %v3188_v48 = vshrl.u32 %v3079_v38, 16  ;;  %v3191_v4 = vshll.u32 %v3079_v38, 16  ;;  %v3176_v50 = vsel %vm5463_vm9, %v3171_v13, %v3175_v16  ;;  %v1723_v54 = vrot.slane %v1721_v49, 7  ;;  %v3086_v16 = vld [vmem:[#allocation2 + $0xac] sm:$0xf] }
 0x1aa   : > { %4135 = vmatprep.mubr.msk.bf16.mxu1 %vm852_vm5, %v3848_v29  ;;  %v3181_v20 = vrot.slane %v3180_v26, 4  ;;  %v3197_v51 = vshll.u32 %v3080_v1, 16  ;;  %v1717_v8 = vor.u32 %v1715_v24, %v1714_v6  ;;  %v1719_v7 = vrot.slane %v1714_v6, 4  ;;  %v586_v49 = vld [vmem:[#allocation2 + $0xc4] sm:$0x1] }
 0x1ab   : > { %v3190_v36 = vrot.slane %v3188_v48, 4  ;;  %v3193_v53 = vrot.slane %v3191_v4, 5  ;;  %v1726_v27 = vor.u32 %v1724_v60, %v1723_v54  ;;  %v3201_v9 = vshrl.u32 %v3080_v1, 16  ;;  %v3088_v6 = vld [vmem:[#allocation2 + $0xbc] sm:$0xf] }
 0x1ac   : > { %v3186_v37 = vsel %vm5463_vm9, %v3181_v20, %v3185_v47  ;;  %v3199_v39 = vrot.slane %v3197_v51, 5  ;;  %v1718_v32 = vsel %vm5488_vm10, %v3841_v45, %v1717_v8  ;;  %v3207_v18 = vshll.u32 %v3081_v19, 16  ;;  %v3087_v45 = vld [vmem:[#allocation2 + $0xb0] sm:$0x1]  ;;  %v3089_v19 = vld [vmem:[#allocation2 + $0xc0] sm:$0xf] }
 0x1ad   : > { %v3943_v35 = vcombine.low %v3176_v50, %v3186_v37  ;;  %v3194_v25 = vor.u32 %v3193_v53, %v3190_v36  ;;  %v1727_v15 = vsel %vm5488_vm10, %v1719_v7, %v1726_v27  ;;  %v3203_v41 = vrot.slane %v3201_v9, 4 }
 0x1ae   : > { %v3864_v30 = vcombine.low %v5977_v10, %v5982_v62  ;;  %v3212_v3 = vshrl.u32 %v3082_v40, 16  ;;  %v3849_v59 = vcombine.low %v1718_v32, %v1727_v15  ;;  %v3209_v61 = vrot.slane %v3207_v18, 5 }
 0x1af   : > { %4228 = vmatmul.mubr.msk.bf16.gmra.mrb[4].mxu0 %vm852_vm5, %v3943_v35  ;;  %v3195_v31 = vrot.slane %v3194_v25, 4  ;;  %v3215_v21 = vshll.u32 %v3082_v40, 16  ;;  %v3204_v55 = vor.u32 %v3203_v41, %v3199_v39  ;;  %v3221_v23 = vshll.u32 %v3083_v34, 16 }
 0x1b0   : > { %v3214_v44 = vrot.slane %v3212_v3, 4  ;;  %v3225_v52 = vshrl.u32 %v3083_v34, 16  ;;  %4136 = vmatmul.mubr.msk.bf16.gmra.mrb[12].mxu1 %vm852_vm5, %v3849_v59  ;;  %v3231_v62 = vshll.u32 %v3084_v0, 16  ;;  %v3865_v33 = vcombine.low %v6003_v28, %v6011_v5 }
 0x1b1   : > { %v3200_v14 = vsel %vm5463_vm9, %v3195_v31, %v3199_v39  ;;  %v3217_v10 = vrot.slane %v3215_v21, 5  ;;  %v3205_v17 = vrot.slane %v3204_v55, 4  ;;  %4151 = vmatprep.mubr.msk.bf16.mxu1 %vm852_vm5, %v3864_v30  ;;  %v3223_v42 = vrot.slane %v3221_v23, 5 }
 0x1b2   : > { %v3227_v57 = vrot.slane %v3225_v52, 4  ;;  %v3236_v47 = vshrl.u32 %v3085_v43, 16  ;;  %v3233_v56 = vrot.slane %v3231_v62, 5  ;;  %v3239_v11 = vshll.u32 %v3085_v43, 16 }
 0x1b3   : > { %v3218_v38 = vor.u32 %v3217_v10, %v3214_v44  ;;  %v3245_v24 = vshll.u32 %v3086_v16, 16  ;;  %v3210_v1 = vsel %vm5463_vm9, %v3205_v17, %v3209_v61  ;;  %v3249_v26 = vshrl.u32 %v3086_v16, 16 }
 0x1b4   : > { %v3228_v29 = vor.u32 %v3227_v57, %v3223_v42  ;;  %v3238_v13 = vrot.slane %v3236_v47, 4  ;;  %v3944_v28 = vcombine.low %v3200_v14, %v3210_v1  ;;  %v3241_v60 = vrot.slane %v3239_v11, 5  ;;  %v6115_v47 = vld [vmem:[%s6439_s24] ss:$0 sm:$0xff] }
 0x1b5   : > { %v3219_v5 = vrot.slane %v3218_v38, 4  ;;  %v3247_v48 = vrot.slane %v3245_v24, 5  ;;  %v3251_v50 = vrot.slane %v3249_v26, 4  ;;  %v3255_v20 = vshll.u32 %v3087_v45, 16 }
 0x1b6   : > { %v3229_v4 = vrot.slane %v3228_v29, 4  ;;  %v3866_v54 = vcombine.low %v6027_v63, %v6035_v58  ;;  %4231 = vmatprep.mubr.msk.bf16.mxu0 %vm852_vm5, %v3944_v28  ;;  %v3242_v8 = vor.u32 %v3241_v60, %v3238_v13  ;;  %v587_v7 = vsel %vm5289_vm2, 0, %v586_v49 }
 0x1b7   : > { %v3224_v51 = vsel %vm5463_vm9, %v3219_v5, %v3223_v42  ;;  %v3260_v36 = vshrl.u32 %v3088_v6, 16  ;;  %v3252_v40 = vor.u32 %v3251_v50, %v3247_v48  ;;  %v3257_v37 = vrot.slane %v3255_v20, 5  ;;  %588 = vst [vmem:[#allocation2 + $0xc4] sm:$0x1] %v587_v7  ;;  %v6110_v42 = vld [vmem:[%s6438_s20] ss:$0 sm:$0xff] }
 0x1b8   : > { %v3234_v53 = vsel %vm5463_vm9, %v3229_v4, %v3233_v56  ;;  %v3263_v27 = vshll.u32 %v3088_v6, 16  ;;  %4152 = vmatmul.mubr.msk.bf16.vlgmr.msra.gmra.mrb[8].mxu1 %vm852_vm5, %v3865_v33  ;;  %v3243_v63 = vrot.slane %v3242_v8, 4  ;;  %v3269_v9 = vshll.u32 %v3089_v19, 16  ;;  %s4683_s20 = scalar_lea.vmem %s4682_s4, 4096 }
 0x1b9   : > { %v3945_v39 = vcombine.low %v3224_v51, %v3234_v53  ;;  %v3262_v58 = vrot.slane %v3260_v36, 4  ;;  %v3253_v35 = vrot.slane %v3252_v40, 4  ;;  %4155 = vmatprep.mubr.msk.bf16.mxu1 %vm852_vm5, %v3866_v54  ;;  %v3273_v2 = vshrl.u32 %v3089_v19, 16  ;;  %p4685_p8 = scmp.lt.s32.totalorder %s4683_s20, %s4677_s15 }
 0x1ba   : > { %v3265_v32 = vrot.slane %v3263_v27, 5  ;;  %v3248_v25 = vsel %vm5463_vm9, %v3243_v63, %v3247_v48  ;;  %v3271_v18 = vrot.slane %v3269_v9, 5  ;;  %v3867_v0 = vcombine.low %v6049_v22, %v6053_v46 }
 0x1bb   : > { %4232 = vmatmul.mubr.msk.bf16.gmra.mrb[8].mxu0 %vm852_vm5, %v3945_v39  ;;  %v3258_v34 = vsel %vm5463_vm9, %v3253_v35, %v3257_v37  ;;  %v3275_v41 = vrot.slane %v3273_v2, 4  ;;  %p4686_p1 = por %p4685_p8, %p4684_p12 }
 0x1bc   : > { %v3266_v15 = vor.u32 %v3265_v32, %v3262_v58  ;;  %v3946_v30 = vcombine.low %v3248_v25, %v3258_v34 }
 0x1bd   : > { %v3276_v59 = vor.u32 %v3275_v41, %v3271_v18  ;;  %p4687_p4 = pnand %p4686_p1, %p4680_p10 }
 0x1be   : > { %v3267_v3 = vrot.slane %v3266_v15, 4  ;;  %4235 = vmatprep.mubr.msk.bf16.mxu0 %vm852_vm5, %v3946_v30  ;;  %v3090_v31 = vld [vmem:[#allocation2 + $0xc4] sm:$0x1] }
 0x1bf   : > { %v3277_v61 = vrot.slane %v3276_v59, 4  ;;  %v3279_v21 = vshll.u32 %v3090_v31, 16 }
 0x1c0   : > { %4156 = vmatmul.mubr.msk.bf16.gmra.mrb[12].mxu1 %vm852_vm5, %v3867_v0  ;;  %v3272_v43 = vsel %vm5463_vm9, %v3267_v3, %v3271_v18 }
 0x1c1   : > { %v3281_v55 = vrot.slane %v3279_v21, 5 }
 0x1c3   : > { %v3282_v44 = vsel %vm5463_vm9, %v3277_v61, %v3281_v55 }
 0x1c4   : > { %v3947_v23 = vcombine.low %v3272_v43, %v3282_v44 }
 0x1c6   : > { %4236 = vmatmul.mubr.msk.bf16.gmra.mrb[12].mxu0 %vm852_vm5, %v3947_v23 }
 0x265   : > { %v4125_v22 = vpop.f32.mrb[0].mxu1 }
 0x266   : > { %v1827_v46 = vpop.f32.mrb[1].mxu1 }
 0x267   : > { %v4126_v52 = vpop.f32.mrb[2].mxu1 }
 0x268   : > { %v1830_v16 = vpop.f32.mrb[3].mxu1 }
 0x26d   : > { %v4129_v14 = vpop.f32.mrb[4].mxu1 }
 0x26e   : > { %v1843_v10 = vpop.f32.mrb[5].mxu1 }
 0x26f   : > { %v4130_v62 = vpop.f32.mrb[6].mxu1 }
 0x270   : > { %v1846_v33 = vpop.f32.mrb[7].mxu1 }
 0x274   : > { %v4225_v17 = vpop.f32.mrb[0].mxu0 }
 0x275   : > { %v4243_v12 = vadd.f32 %v4225_v17, %v4125_v22  ;;  %v3382_v57 = vpop.f32.mrb[1].mxu0 }
 0x276   : > { %v4244_v38 = vadd.f32 %v3382_v57, %v1827_v46  ;;  %v4226_v56 = vpop.f32.mrb[2].mxu0 }
 0x277   : > { %v3470_v45 = vmul.f32 %v4243_v12, %v6110_v42  ;;  %v4245_v11 = vadd.f32 %v4226_v56, %v4126_v52  ;;  %v3385_v24 = vpop.f32.mrb[3].mxu0 }
 0x278   : > { %v3468_v1 = vmul.f32 %v4244_v38, %v6110_v42  ;;  %v4246_v29 = vadd.f32 %v3385_v24, %v1830_v16 }
 0x279   : > { %v3493_v13 = vadd.f32 %v6115_v47, %v3470_v45  ;;  %v3471_v26 = vmul.f32 %v4245_v11, %v6110_v42 }
 0x27a   : > { %v3491_v49 = vadd.f32 %v6115_v47, %v3468_v1  ;;  %v3469_v6 = vmul.f32 %v4246_v29, %v6110_v42 }
 0x27b   : > { %v3509_v28 = vmax.f32 %v3493_v13, 0.0  ;;  %v3494_v5 = vadd.f32 %v6115_v47, %v3471_v26 }
 0x27c   : > { %v3507_v60 = vmax.f32 %v3491_v49, 0.0  ;;  %v3492_v48 = vadd.f32 %v6115_v47, %v3469_v6 }
 0x27d   : > { %3526 = vst.msk [vmem:[%s6126_s17 + $0x10] sm:$0xff] %vm3523_vm15, %v3509_v28  ;;  %v3510_v4 = vmax.f32 %v3494_v5, 0.0 }
 0x27e   : > { %3524 = vst.msk [vmem:[%s6126_s17] sm:$0xff] %vm3523_vm15, %v3507_v60  ;;  %v3508_v50 = vmax.f32 %v3492_v48, 0.0 }
 0x27f   : > { %3527 = vst.msk [vmem:[%s6126_s17 + $0x18] sm:$0xff] %vm3523_vm15, %v3510_v4 }
 0x280   : > { %3525 = vst.msk [vmem:[%s6126_s17 + $0x8] sm:$0xff] %vm3523_vm15, %v3508_v50 }
 0x282   : > { %v4229_v20 = vpop.f32.mrb[4].mxu0 }
 0x283   : > { %v4247_v54 = vadd.f32 %v4229_v20, %v4129_v14  ;;  %v3398_v19 = vpop.f32.mrb[5].mxu0 }
 0x284   : > { %v4248_v51 = vadd.f32 %v3398_v19, %v1843_v10  ;;  %v4230_v8 = vpop.f32.mrb[6].mxu0 }
 0x285   : > { %v3474_v7 = vmul.f32 %v4247_v54, %v6110_v42  ;;  %v4249_v36 = vadd.f32 %v4230_v8, %v4130_v62  ;;  %v3401_v53 = vpop.f32.mrb[7].mxu0 }
 0x286   : > { %v3472_v40 = vmul.f32 %v4248_v51, %v6110_v42  ;;  %v4250_v37 = vadd.f32 %v3401_v53, %v1846_v33 }
 0x287   : > { %v3497_v27 = vadd.f32 %v6115_v47, %v3474_v7  ;;  %v3475_v39 = vmul.f32 %v4249_v36, %v6110_v42 }
 0x288   : > { %v3495_v63 = vadd.f32 %v6115_v47, %v3472_v40  ;;  %v3473_v58 = vmul.f32 %v4250_v37, %v6110_v42 }
 0x289   : > { %v3513_v9 = vmax.f32 %v3497_v27, 0.0  ;;  %v3498_v35 = vadd.f32 %v6115_v47, %v3475_v39 }
 0x28a   : > { %v3511_v32 = vmax.f32 %v3495_v63, 0.0  ;;  %v3496_v2 = vadd.f32 %v6115_v47, %v3473_v58 }
 0x28b   : > { %3530 = vst.msk [vmem:[%s6126_s17 + $0x30] sm:$0xff] %vm3523_vm15, %v3513_v9  ;;  %v3514_v25 = vmax.f32 %v3498_v35, 0.0  ;;  %v4153_v34 = vpop.f32.mrb[8].mxu1 }
 0x28c   : > { %3528 = vst.msk [vmem:[%s6126_s17 + $0x20] sm:$0xff] %vm3523_vm15, %v3511_v32  ;;  %v3512_v18 = vmax.f32 %v3496_v2, 0.0  ;;  %v2053_v15 = vpop.f32.mrb[9].mxu1 }
 0x28d   : > { %3531 = vst.msk [vmem:[%s6126_s17 + $0x38] sm:$0xff] %vm3523_vm15, %v3514_v25  ;;  %v4154_v30 = vpop.f32.mrb[10].mxu1 }
 0x28e   : > { %3529 = vst.msk [vmem:[%s6126_s17 + $0x28] sm:$0xff] %vm3523_vm15, %v3512_v18  ;;  %v4233_v41 = vpop.f32.mrb[8].mxu0  ;;  %v2056_v59 = vpop.f32.mrb[11].mxu1 }
 0x28f   : > { %v4251_v0 = vadd.f32 %v4233_v41, %v4153_v34  ;;  %v3414_v3 = vpop.f32.mrb[9].mxu0 }
 0x290   : > { %v4252_v31 = vadd.f32 %v3414_v3, %v2053_v15  ;;  %v4234_v61 = vpop.f32.mrb[10].mxu0 }
 0x291   : > { %v3478_v21 = vmul.f32 %v4251_v0, %v6110_v42  ;;  %v4253_v43 = vadd.f32 %v4234_v61, %v4154_v30  ;;  %v3417_v55 = vpop.f32.mrb[11].mxu0 }
 0x292   : > { %v3476_v44 = vmul.f32 %v4252_v31, %v6110_v42  ;;  %v4254_v23 = vadd.f32 %v3417_v55, %v2056_v59 }
 0x293   : > { %v3501_v22 = vadd.f32 %v6115_v47, %v3478_v21  ;;  %v3479_v46 = vmul.f32 %v4253_v43, %v6110_v42  ;;  %v4157_v14 = vpop.f32.mrb[12].mxu1 }
 0x294   : > { %v3499_v52 = vadd.f32 %v6115_v47, %v3476_v44  ;;  %v3477_v16 = vmul.f32 %v4254_v23, %v6110_v42  ;;  %v2069_v33 = vpop.f32.mrb[13].mxu1 }
 0x295   : > { %v3517_v10 = vmax.f32 %v3501_v22, 0.0  ;;  %v3502_v62 = vadd.f32 %v6115_v47, %v3479_v46  ;;  %v4158_v57 = vpop.f32.mrb[14].mxu1 }
 0x296   : > { %v3515_v17 = vmax.f32 %v3499_v52, 0.0  ;;  %v3500_v12 = vadd.f32 %v6115_v47, %v3477_v16  ;;  %v2072_v56 = vpop.f32.mrb[15].mxu1 }
 0x297   : > { %3534 = vst.msk [vmem:[%s6126_s17 + $0x50] sm:$0xff] %vm3523_vm15, %v3517_v10  ;;  %v3518_v38 = vmax.f32 %v3502_v62, 0.0 }
 0x298   : > { %3532 = vst.msk [vmem:[%s6126_s17 + $0x40] sm:$0xff] %vm3523_vm15, %v3515_v17  ;;  %v3516_v45 = vmax.f32 %v3500_v12, 0.0 }
 0x299   : > { %3535 = vst.msk [vmem:[%s6126_s17 + $0x58] sm:$0xff] %vm3523_vm15, %v3518_v38  ;;  %v4237_v11 = vpop.f32.mrb[12].mxu0 }
 0x29a   : > { %3533 = vst.msk [vmem:[%s6126_s17 + $0x48] sm:$0xff] %vm3523_vm15, %v3516_v45  ;;  %v4255_v24 = vadd.f32 %v4237_v11, %v4157_v14  ;;  %v3430_v1 = vpop.f32.mrb[13].mxu0 }
 0x29b   : > { %v4256_v29 = vadd.f32 %v3430_v1, %v2069_v33  ;;  %v4238_v13 = vpop.f32.mrb[14].mxu0 }
 0x29c   : > { %v3482_v26 = vmul.f32 %v4255_v24, %v6110_v42  ;;  %v4257_v49 = vadd.f32 %v4238_v13, %v4158_v57  ;;  %v3433_v6 = vpop.f32.mrb[15].mxu0 }
 0x29d   : > { %v3480_v28 = vmul.f32 %v4256_v29, %v6110_v42  ;;  %v4258_v5 = vadd.f32 %v3433_v6, %v2072_v56 }
 0x29e   : > { %v3505_v60 = vadd.f32 %v6115_v47, %v3482_v26  ;;  %v3483_v48 = vmul.f32 %v4257_v49, %v6110_v42 }
 0x29f   : > { %v3503_v4 = vadd.f32 %v6115_v47, %v3480_v28  ;;  %v3481_v50 = vmul.f32 %v4258_v5, %v6110_v42 }
 0x2a0   : > { %v3521_v20 = vmax.f32 %v3505_v60, 0.0  ;;  %v3506_v54 = vadd.f32 %v6115_v47, %v3483_v48 }
 0x2a1   : > { %v3519_v19 = vmax.f32 %v3503_v4, 0.0  ;;  %v3504_v51 = vadd.f32 %v6115_v47, %v3481_v50 }
 0x2a2   : > { %3538 = vst.msk [vmem:[%s6126_s17 + $0x70] sm:$0xff] %vm3523_vm15, %v3521_v20  ;;  %v3522_v8 = vmax.f32 %v3506_v54, 0.0 }
 0x2a3   : > { %3536 = vst.msk [vmem:[%s6126_s17 + $0x60] sm:$0xff] %vm3523_vm15, %v3519_v19  ;;  %v3520_v42 = vmax.f32 %v3504_v51, 0.0 }
 0x2a4   : > { %3539 = vst.msk [vmem:[%s6126_s17 + $0x78] sm:$0xff] %vm3523_vm15, %v3522_v8 }
 0x2a5   : > { %3537 = vst.msk [vmem:[%s6126_s17 + $0x68] sm:$0xff] %vm3523_vm15, %v3520_v42 }
 0x2a6   : > { %4690 = shalt.err (!%p4687_p4)
}
 0x2a7   : > { %s4691_s3 = scalar_lea.hbm %s6184_s11, 2048  ;;  %s4695_s18 = scalar_lea.hbm %s6442_s13, 8192 }
 0x2a8   : > { %p4692_p9 = scmp.ne.s32.totalorder %s6184_s11, %s4691_s3  ;;  %p4696_p5 = scmp.lt.u32.totalorder %s6184_s11, %s6442_s13 }
 0x2a9   : > { %p4697_p7 = scmp.lt.u32.totalorder %s4695_s18, %s4691_s3  ;;  %p4699_p2 = scmp.lt.u32.totalorder %s4691_s3, %s6184_s11 }
 0x2aa   : > { %p4693_p3 = pnand %p4692_p9, %p6443_p6 }
 0x2ab   : > { %p4698_p11 = por %p4697_p7, %p4696_p5 }
 0x2ac   : > { %p4694_p13 = pneg %p4693_p3 }
 0x2ad   : > { %p4700_p0 = por %p4699_p2, %p4698_p11 }
 0x2af   : > { %p4701_p10 = pnand %p4700_p0, %p4694_p13 }
 0x2b1   : > { %4704 = shalt.err (!%p4701_p10)
}
 0x2b2   : > { %s4844_s27 = smov 128   ;;  %s4845_s28 = smov 8  }
 0x2b3   : > { %4381 = dma.vmem_to_hbm [thread:$0]  (%p6443_p6), %s6186_s30, 2048, %s6184_s11, %s3541_s14, %s4844_s27, %s4844_s27, %s4845_s28  }
 0x2b4 PF: > { %s6444_s7 = sld [smem:[#allocation17_spill]]  ;;  %s6445_s2 = sld [smem:[#allocation25_spill]] }
 0x2b5   : > { %p4404_p12 = scmp.ge.s32.totalorder %s4835_s10, 2 }
 0x2ba   : > { %s3573_s5 = sand.u32 1, %s6444_s7   ;;  %p6446_p8 = scmp.ne.s32.totalorder %s6445_s2, 0 }
 0x2bb   : > { %s3574_s9 = scalar_lea.sflag [#allocation5], %s3573_s5 }
 0x2bc   : > { %p4398_p1 = pnand %p4404_p12, %p6446_p8 }
 0x2be   : > { %4778 = dma.done.wait (!%p4398_p1), %s3574_s9, 2048  }
 0x2bf   : > { %4780 = vsyncadd (!%p4398_p1), %s3574_s9, 4294965248  ;;  %s26_s10 = sadd.s32 1, %s4835_s10   ;;  %s6448_s24 = sld [smem:[#allocation18_spill]] }
 0x2c0   : > { %p6223_p4 = scmp.ge.s32.totalorder %s26_s10, 6   ;;  %s6449_s27 = sld [smem:[#allocation19_spill]] }
 0x2c1   : > { %s6450_s1 = sld [smem:[#allocation30_spill]]  ;;  %s6451_s30 = sld [smem:[#allocation22_spill]] }
 0x2c2   : > { %s6452_s7 = sld [smem:[#allocation23_spill]]  ;;  %s6453_s8 = sld [smem:[#allocation24_spill]] }
 0x2c3   : > { %s6454_s9 = sld [smem:[#allocation28_spill]]  ;;  %s6455_s21 = smov %s4787_s22 }
 0x2c4   : > { %s6456_s22 = smov %s4791_s23  ;;  %s6457_s23 = smov %s5209_s25 }
 0x2c5   : > { %s6458_s25 = smov %s4803_s26  ;;  %s6459_s26 = smov %s5133_s6 }
 0x2c6   : > { %s6460_s28 = smov %s4815_s29  ;;  %25 = sbr.rel (!%p6223_p4) target bundleno = 20 (0x14), region = 135 }
 0x2c7   : > { %s6461_s29 = smov %s6450_s1 }
 0x2cd   :  { %3579 = vsyncpa [#allocation4], 1 }
 0x2ce   :  { %3581 = vsyncpa [#allocation4 + $0x1], 1 }
 0x2cf   :  { %3582 = vsyncpa [#allocation7], 1 }
 0x2d0   :  { %3584 = vsyncpa [#allocation7 + $0x1], 1 }
 0x2d1   :  { %3585 = vsyncpa [#allocation10], 1 }
 0x2d2   :  { %3586 = vsyncpa [#allocation5], 1 }
 0x2d3   :  { %3588 = vsyncpa [#allocation5 + $0x1], 1 }

</bundles_post_ra>
